<compile_context>
chip_gen: v5e
topology: v5e:2x2
jax: 0.10.0
libtpu: 0.0.40
codegen_flags: <defaults>
</compile_context>

<pallas_src>
import functools

import jax
import jax.numpy as jnp
from jax.experimental import pallas as pl
from jax.experimental.pallas import tpu as pltpu


# ---------------------------------------------------------------------------
# Generation-aware compiler params / tiling helpers
# ---------------------------------------------------------------------------
@functools.lru_cache(maxsize=None)
def _vmem_limit_bytes():
    cap = 128 * 1024 * 1024
    try:
        info = pltpu.get_tpu_info()
        cap = int(getattr(info, "vmem_capacity_bytes", cap))
    except Exception:
        pass
    # ~75% of physical VMEM, capped at 100 MiB (96 MiB v5e/v6e, ~48 MiB v7x).
    return int(min(100 * 1024 * 1024, (cap * 3) // 4))


def _compiler_params(sem):
    return pltpu.CompilerParams(
        dimension_semantics=sem,
        vmem_limit_bytes=_vmem_limit_bytes(),
    )


def _round_up(x, m):
    return ((x + m - 1) // m) * m


def _pick_row_tile(num_rows, bytes_per_row, cap_bytes, min_tiles=1):
    """Largest divisor t of num_rows with t*bytes_per_row <= cap_bytes and
    num_rows // t >= min_tiles (min_tiles is relaxed if unachievable)."""
    best = None
    for t in range(1, num_rows + 1):
        if num_rows % t:
            continue
        if t * bytes_per_row > cap_bytes:
            continue
        if num_rows // t < min_tiles:
            continue
        best = t
    if best is None:
        for t in range(1, num_rows + 1):
            if num_rows % t == 0 and t * bytes_per_row <= cap_bytes:
                best = t
    return best if best is not None else 1


# ---------------------------------------------------------------------------
# Direct 3x3 conv (pad 1, stride 1) + bias + ReLU
# ---------------------------------------------------------------------------
def _conv3x3_kernel(x_ref, w_ref, b_ref, o_ref, *, th, W, Wp, cout):
    # x_ref : (1, (H+3)*Wp, Cin) f32  zero-padded, spatially flattened image
    # w_ref : (9, Cin, Cout)     bf16 tap-major weights (t = 3*ky + kx)
    # b_ref : (1, Cout)          f32
    # o_ref : (1, th, W, Cout)   f32 output row tile
    r = pl.program_id(1)
    row0 = r * th
    twp = th * Wp
    acc = None
    for ky in range(3):
        # Aligned dynamic slice on the sublane axis (Wp % 8 == 0).
        start = pl.multiple_of((row0 + ky) * Wp, 8)
        win = x_ref[0, pl.ds(start, twp + 8), :]          # (twp+8, Cin) f32
        for kx in range(3):
            tap = win[kx:kx + twp, :].astype(jnp.bfloat16)  # static shift
            d = jnp.dot(tap, w_ref[3 * ky + kx],
                        preferred_element_type=jnp.float32)
            acc = d if acc is None else acc + d
    out = jnp.maximum(acc + b_ref[...], 0.0)              # (twp, Cout) f32
    out = out.reshape(th, Wp, cout)[:, :W, :]             # drop padded cols
    o_ref[0] = out.astype(o_ref.dtype)


def conv3x3_relu(x_nhwc, w9, b):
    """3x3 / stride 1 / pad 1 conv + bias + ReLU.

    w9 is (9, Cin, Cout) bf16 with tap index t = 3*ky + kx (HWIO weights
    reshaped).  NOTE: real PyTorch weights are (Cout, Cin, kH, kW) and must be
    transposed to (kH, kW, Cin, Cout) before that reshape.
    """
    N, H, W, cin = x_nhwc.shape
    cout = w9.shape[-1]
    Wp = _round_up(W + 2, 8)  # padded width rounded up to a sublane multiple
    # rows padded to H+3 (1 top, 2 bottom) so every tap can read th+1 rows.
    xp = jnp.pad(x_nhwc, ((0, 0), (1, 2), (1, Wp - W - 1), (0, 0)))
    xf = xp.reshape(N, (H + 3) * Wp, cin)  # free contiguous flatten
    th = _pick_row_tile(H, Wp * cout * 4, 2 * 1024 * 1024, min_tiles=2)
    kern = functools.partial(_conv3x3_kernel, th=th, W=W, Wp=Wp, cout=cout)
    return pl.pallas_call(
        kern,
        out_shape=jax.ShapeDtypeStruct((N, H, W, cout), jnp.float32),
        grid_spec=pltpu.PrefetchScalarGridSpec(
            num_scalar_prefetch=0,
            grid=(N, H // th),
            in_specs=[
                # whole padded image of batch element n stays resident in VMEM
                pl.BlockSpec((1, (H + 3) * Wp, cin), lambda n, r: (n, 0, 0)),
                pl.BlockSpec((9, cin, cout), lambda n, r: (0, 0, 0)),
                pl.BlockSpec((1, cout), lambda n, r: (0, 0)),
            ],
            out_specs=pl.BlockSpec((1, th, W, cout), lambda n, r: (n, r, 0, 0)),
        ),
        compiler_params=_compiler_params(("parallel", "arbitrary")),
    )(xf, w9, b.reshape(1, cout))


# ---------------------------------------------------------------------------
# 2x2 max-pool, stride 2 (single read of the activation)
# ---------------------------------------------------------------------------
def _maxpool2x2_kernel(x_ref, o_ref, *, C):
    # x_ref: (1, 2*tph, Wo, 2*C) — adjacent column pairs folded into lanes
    # o_ref: (1, tph, Wo, C)
    tph = o_ref.shape[1]
    xv = x_ref[0]                                     # (2*tph, Wo, 2C)
    xv = xv.reshape(tph, 2, xv.shape[1], 2 * C)       # split leading rows
    rmax = jnp.maximum(xv[:, 0], xv[:, 1])            # (tph, Wo, 2C)
    o_ref[0] = jnp.maximum(rmax[:, :, :C], rmax[:, :, C:])


def maxpool2x2(x_nhwc):
    N, H, W, C = x_nhwc.shape
    Ho, Wo = H // 2, W // 2
    # Free reinterpretation (contiguous): (N,H,W,C) -> (N,H,Wo,2C).
    xr = x_nhwc.reshape(N, H, Wo, 2 * C)
    tph = _pick_row_tile(Ho, 2 * W * C * 4, 2 * 1024 * 1024)
    kern = functools.partial(_maxpool2x2_kernel, C=C)
    return pl.pallas_call(
        kern,
        out_shape=jax.ShapeDtypeStruct((N, Ho, Wo, C), jnp.float32),
        grid_spec=pltpu.PrefetchScalarGridSpec(
            num_scalar_prefetch=0,
            grid=(N, Ho // tph),
            in_specs=[pl.BlockSpec((1, 2 * tph, Wo, 2 * C),
                                   lambda n, r: (n, r, 0, 0))],
            out_specs=pl.BlockSpec((1, tph, Wo, C), lambda n, r: (n, r, 0, 0)),
        ),
        compiler_params=_compiler_params(("parallel", "arbitrary")),
    )(xr)


# ---------------------------------------------------------------------------
# Linear (+ optional ReLU), K-tiled with VMEM accumulator, bf16 weights
# ---------------------------------------------------------------------------
def _linear_kernel(x_ref, w_ref, b_ref, o_ref, acc_ref, *, relu):
    k = pl.program_id(1)

    @pl.when(k == 0)
    def _():
        acc_ref[...] = jnp.zeros_like(acc_ref)

    acc_ref[...] += jnp.dot(x_ref[...].astype(jnp.bfloat16), w_ref[...],
                            preferred_element_type=jnp.float32)

    @pl.when(k == pl.num_programs(1) - 1)
    def _():
        r = acc_ref[...] + b_ref[...]
        if relu:
            r = jnp.maximum(r, 0.0)
        o_ref[...] = r.astype(o_ref.dtype)


def linear(x, w, b, *, tk, tn, relu):
    """x: (M, K) f32, w: (K, N) bf16, b: (N,) f32."""
    M, K = x.shape
    Kw, Nout = w.shape
    assert K == Kw and K % tk == 0 and Nout % tn == 0
    kernel = functools.partial(_linear_kernel, relu=relu)
    return pl.pallas_call(
        kernel,
        out_shape=jax.ShapeDtypeStruct((M, Nout), jnp.float32),
        grid_spec=pltpu.PrefetchScalarGridSpec(
            num_scalar_prefetch=0,
            # NOTE: the K (reduction) axis must stay the innermost grid axis
            # for the accumulator init/finalize pattern to be correct.
            grid=(Nout // tn, K // tk),
            in_specs=[
                pl.BlockSpec((M, tk), lambda j, k: (0, k)),
                pl.BlockSpec((tk, tn), lambda j, k: (k, j)),
                pl.BlockSpec((1, tn), lambda j, k: (0, j)),
            ],
            out_specs=pl.BlockSpec((M, tn), lambda j, k: (0, j)),
            scratch_shapes=[pltpu.VMEM((M, tn), jnp.float32)],
        ),
        compiler_params=_compiler_params(("parallel", "arbitrary")),
    )(x, w, b.reshape(1, Nout))


# ---------------------------------------------------------------------------
# VGG-11 model (synthetic deterministic weights)
# ---------------------------------------------------------------------------
CONV_CFG = [(3, 64), (64, 128), (128, 256), (256, 256),
            (256, 512), (512, 512), (512, 512), (512, 512)]
FC_CFG = [(25088, 4096), (4096, 4096), (4096, 1000)]
POOL_AFTER = {0, 1, 3, 5, 7}   # conv index followed by a max-pool


def init_params(key):
    keys = jax.random.split(key, 2 * (len(CONV_CFG) + len(FC_CFG)))
    ki = 0
    convs = []
    for cin, cout in CONV_CFG:
        std = (2.0 / (9 * cin)) ** 0.5
        w = std * jax.random.normal(keys[ki], (3, 3, cin, cout), jnp.float32)
        ki += 1
        bb = 0.01 * jax.random.normal(keys[ki], (cout,), jnp.float32)
        ki += 1
        convs.append((w.reshape(9, cin, cout).astype(jnp.bfloat16), bb))
    fcs = []
    for li, (fin, fout) in enumerate(FC_CFG):
        std = (2.0 / fin) ** 0.5
        w = std * jax.random.normal(keys[ki], (fin, fout), jnp.float32)
        ki += 1
        bb = 0.01 * jax.random.normal(keys[ki], (fout,), jnp.float32)
        ki += 1
        if li == 0:
            # fc1 rows are generated in torch flatten order (c, h, w); permute
            # them once to NHWC flatten order (h, w, c) so the forward pass
            # can flatten the NHWC activation directly (no runtime transpose).
            perm = jnp.transpose(jnp.arange(25088).reshape(512, 7, 7),
                                 (1, 2, 0)).reshape(-1)
            w = w[perm]
        fcs.append((w.astype(jnp.bfloat16), bb))
    return convs, fcs


def vgg11_forward(x_nchw, convs, fcs):
    x = jnp.transpose(x_nchw, (0, 2, 3, 1)).astype(jnp.float32)  # NCHW -> NHWC
    for idx, (w9, b) in enumerate(convs):
        x = conv3x3_relu(x, w9, b)      # Conv2d + ReLU (fused in kernel)
        if idx in POOL_AFTER:
            x = maxpool2x2(x)           # MaxPool2d(2, 2)
    N = x.shape[0]
    x = x.reshape(N, -1)                # NHWC flatten; fc1 rows pre-permuted
    (w0, b0), (w1, b1), (w2, b2) = fcs
    # TODO(synk): nn.Dropout(p=0.5) treated as identity (inference mode).
    x = linear(x, w0, b0, tk=3584, tn=1024, relu=True)   # classifier_0 + ReLU
    x = linear(x, w1, b1, tk=2048, tn=1024, relu=True)   # classifier_3 + ReLU
    x = linear(x, w2, b2, tk=2048, tn=1000, relu=False)  # classifier_6
    return x


# ---------------------------------------------------------------------------
# Small numerical self-checks against plain-JAX references
# ---------------------------------------------------------------------------
def _self_check():
    key = jax.random.PRNGKey(42)
    k1, k2, k3, k4, k5 = jax.random.split(key, 5)

    # conv + bias + relu
    x = jax.random.normal(k1, (1, 16, 16, 8), jnp.float32)
    w = 0.1 * jax.random.normal(k2, (3, 3, 8, 16), jnp.float32)
    b = 0.1 * jax.random.normal(k3, (16,), jnp.float32)
    got = conv3x3_relu(x, w.reshape(9, 8, 16).astype(jnp.bfloat16), b)
    ref = jax.lax.conv_general_dilated(
        x, w, window_strides=(1, 1), padding="SAME",
        dimension_numbers=("NHWC", "HWIO", "NHWC"))
    ref = jnp.maximum(ref + b, 0.0)
    assert bool(jnp.allclose(got, ref, rtol=5e-2, atol=5e-2)), "conv mismatch"

    # 2x2 max-pool
    p_got = maxpool2x2(got)
    p_ref = jnp.max(got.reshape(1, 8, 2, 8, 2, 16), axis=(2, 4))
    assert bool(jnp.allclose(p_got, p_ref, rtol=1e-5, atol=1e-5)), "pool mismatch"

    # linear + relu
    xl = jax.random.normal(k4, (2, 256), jnp.float32)
    wl = 0.05 * jax.random.normal(k5, (256, 128), jnp.float32)
    bl = jnp.zeros((128,), jnp.float32)
    l_got = linear(xl, wl.astype(jnp.bfloat16), bl, tk=128, tn=128, relu=True)
    l_ref = jnp.maximum(xl @ wl, 0.0)
    assert bool(jnp.allclose(l_got, l_ref, rtol=5e-2, atol=5e-2)), "linear mismatch"


if __name__ == "__main__":
    _self_check()

    key = jax.random.PRNGKey(0)
    pkey, xkey = jax.random.split(key)
    convs, fcs = init_params(pkey)
    # The classifier (in_features = 25088 = 512*7*7) pins the spatial size to
    # 224x224; batch is kept small (2).
    x = jax.random.normal(xkey, (2, 3, 224, 224), jnp.float32)

    fwd = jax.jit(vgg11_forward)
    out = jax.block_until_ready(fwd(x, convs, fcs))
    assert out.shape == (2, 1000)
    assert bool(jnp.all(jnp.isfinite(out)))
    print("KERNEL_OK")
</pallas_src>

<mosaic_0001>
module attributes {stable_mosaic.version = 11 : i64} {
  func.func @_conv3x3_kernel(%arg0: i32, %arg1: i32, %arg2: memref<1x456x8xf32, #tpu.memory_space<vmem>>, %arg3: memref<9x8x16xbf16, #tpu.memory_space<vmem>>, %arg4: memref<1x16xf32, #tpu.memory_space<vmem>>, %arg5: memref<1x8x16x16xf32, #tpu.memory_space<vmem>>) attributes {dimension_semantics = [#tpu.dimension_semantics<parallel>, #tpu.dimension_semantics<arbitrary>], iteration_bounds = array<i64: 1, 2>, scalar_prefetch = 0 : i64, scratch_operands = 0 : i64, tpu.core_type = #tpu.core_type<tc>, window_params = [{transform_indices = @transform_0, window_bounds = array<i64: 1, 456, 8>}, {pipeline_mode = #tpu.pipeline_mode<synchronous>, transform_indices = @transform_1, window_bounds = array<i64: 9, 8, 16>}, {pipeline_mode = #tpu.pipeline_mode<synchronous>, transform_indices = @transform_2, window_bounds = array<i64: 1, 16>}, {transform_indices = @transform_3, window_bounds = array<i64: 1, 8, 16, 16>}]} {
    %c8_i32 = arith.constant 8 : i32
    %0 = arith.muli %arg1, %c8_i32 : i32
    %c0_i32 = arith.constant 0 : i32
    %1 = arith.addi %0, %c0_i32 : i32
    %c24_i32 = arith.constant 24 : i32
    %2 = arith.muli %1, %c24_i32 : i32
    %3 = tpu.assume_multiple %2, 8 : i32
    %c0 = arith.constant 0 : index
    %4 = arith.index_cast %3 : i32 to index
    %c0_0 = arith.constant 0 : index
    %5 = vector.load %arg2[%c0, %4, %c0_0] : memref<1x456x8xf32, #tpu.memory_space<vmem>>, vector<1x200x8xf32>
    %6 = vector.shape_cast %5 : vector<1x200x8xf32> to vector<200x8xf32>
    %7 = vector.extract_strided_slice %6 {offsets = [0, 0], sizes = [192, 8], strides = [1, 1]} : vector<200x8xf32> to vector<192x8xf32>
    %8 = arith.truncf %7 : vector<192x8xf32> to vector<192x8xbf16>
    %c0_1 = arith.constant 0 : index
    %c0_2 = arith.constant 0 : index
    %c0_3 = arith.constant 0 : index
    %9 = vector.load %arg3[%c0_1, %c0_2, %c0_3] : memref<9x8x16xbf16, #tpu.memory_space<vmem>>, vector<1x8x16xbf16>
    %10 = vector.shape_cast %9 : vector<1x8x16xbf16> to vector<8x16xbf16>
    %cst = arith.constant dense<0.000000e+00> : vector<192x16xf32>
    %11 = tpu.matmul %8, %10, %cst {dimension_numbers = #tpu.dot_dimension_numbers<[1], [0], [0], [1], [0, 0, 1, 1], [], []>} : vector<192x8xbf16>, vector<8x16xbf16>, vector<192x16xf32> -> vector<192x16xf32>
    %12 = vector.extract_strided_slice %6 {offsets = [1, 0], sizes = [192, 8], strides = [1, 1]} : vector<200x8xf32> to vector<192x8xf32>
    %13 = arith.truncf %12 : vector<192x8xf32> to vector<192x8xbf16>
    %c1 = arith.constant 1 : index
    %c0_4 = arith.constant 0 : index
    %c0_5 = arith.constant 0 : index
    %14 = vector.load %arg3[%c1, %c0_4, %c0_5] : memref<9x8x16xbf16, #tpu.memory_space<vmem>>, vector<1x8x16xbf16>
    %15 = vector.shape_cast %14 : vector<1x8x16xbf16> to vector<8x16xbf16>
    %cst_6 = arith.constant dense<0.000000e+00> : vector<192x16xf32>
    %16 = tpu.matmul %13, %15, %cst_6 {dimension_numbers = #tpu.dot_dimension_numbers<[1], [0], [0], [1], [0, 0, 1, 1], [], []>} : vector<192x8xbf16>, vector<8x16xbf16>, vector<192x16xf32> -> vector<192x16xf32>
    %17 = arith.addf %11, %16 : vector<192x16xf32>
    %18 = vector.extract_strided_slice %6 {offsets = [2, 0], sizes = [192, 8], strides = [1, 1]} : vector<200x8xf32> to vector<192x8xf32>
    %19 = arith.truncf %18 : vector<192x8xf32> to vector<192x8xbf16>
    %c2 = arith.constant 2 : index
    %c0_7 = arith.constant 0 : index
    %c0_8 = arith.constant 0 : index
    %20 = vector.load %arg3[%c2, %c0_7, %c0_8] : memref<9x8x16xbf16, #tpu.memory_space<vmem>>, vector<1x8x16xbf16>
    %21 = vector.shape_cast %20 : vector<1x8x16xbf16> to vector<8x16xbf16>
    %cst_9 = arith.constant dense<0.000000e+00> : vector<192x16xf32>
    %22 = tpu.matmul %19, %21, %cst_9 {dimension_numbers = #tpu.dot_dimension_numbers<[1], [0], [0], [1], [0, 0, 1, 1], [], []>} : vector<192x8xbf16>, vector<8x16xbf16>, vector<192x16xf32> -> vector<192x16xf32>
    %23 = arith.addf %17, %22 : vector<192x16xf32>
    %c1_i32 = arith.constant 1 : i32
    %24 = arith.addi %0, %c1_i32 : i32
    %c24_i32_10 = arith.constant 24 : i32
    %25 = arith.muli %24, %c24_i32_10 : i32
    %26 = tpu.assume_multiple %25, 8 : i32
    %c0_11 = arith.constant 0 : index
    %27 = arith.index_cast %26 : i32 to index
    %c0_12 = arith.constant 0 : index
    %28 = vector.load %arg2[%c0_11, %27, %c0_12] : memref<1x456x8xf32, #tpu.memory_space<vmem>>, vector<1x200x8xf32>
    %29 = vector.shape_cast %28 : vector<1x200x8xf32> to vector<200x8xf32>
    %30 = vector.extract_strided_slice %29 {offsets = [0, 0], sizes = [192, 8], strides = [1, 1]} : vector<200x8xf32> to vector<192x8xf32>
    %31 = arith.truncf %30 : vector<192x8xf32> to vector<192x8xbf16>
    %c3 = arith.constant 3 : index
    %c0_13 = arith.constant 0 : index
    %c0_14 = arith.constant 0 : index
    %32 = vector.load %arg3[%c3, %c0_13, %c0_14] : memref<9x8x16xbf16, #tpu.memory_space<vmem>>, vector<1x8x16xbf16>
    %33 = vector.shape_cast %32 : vector<1x8x16xbf16> to vector<8x16xbf16>
    %cst_15 = arith.constant dense<0.000000e+00> : vector<192x16xf32>
    %34 = tpu.matmul %31, %33, %cst_15 {dimension_numbers = #tpu.dot_dimension_numbers<[1], [0], [0], [1], [0, 0, 1, 1], [], []>} : vector<192x8xbf16>, vector<8x16xbf16>, vector<192x16xf32> -> vector<192x16xf32>
    %35 = arith.addf %23, %34 : vector<192x16xf32>
    %36 = vector.extract_strided_slice %29 {offsets = [1, 0], sizes = [192, 8], strides = [1, 1]} : vector<200x8xf32> to vector<192x8xf32>
    %37 = arith.truncf %36 : vector<192x8xf32> to vector<192x8xbf16>
    %c4 = arith.constant 4 : index
    %c0_16 = arith.constant 0 : index
    %c0_17 = arith.constant 0 : index
    %38 = vector.load %arg3[%c4, %c0_16, %c0_17] : memref<9x8x16xbf16, #tpu.memory_space<vmem>>, vector<1x8x16xbf16>
    %39 = vector.shape_cast %38 : vector<1x8x16xbf16> to vector<8x16xbf16>
    %cst_18 = arith.constant dense<0.000000e+00> : vector<192x16xf32>
    %40 = tpu.matmul %37, %39, %cst_18 {dimension_numbers = #tpu.dot_dimension_numbers<[1], [0], [0], [1], [0, 0, 1, 1], [], []>} : vector<192x8xbf16>, vector<8x16xbf16>, vector<192x16xf32> -> vector<192x16xf32>
    %41 = arith.addf %35, %40 : vector<192x16xf32>
    %42 = vector.extract_strided_slice %29 {offsets = [2, 0], sizes = [192, 8], strides = [1, 1]} : vector<200x8xf32> to vector<192x8xf32>
    %43 = arith.truncf %42 : vector<192x8xf32> to vector<192x8xbf16>
    %c5 = arith.constant 5 : index
    %c0_19 = arith.constant 0 : index
    %c0_20 = arith.constant 0 : index
    %44 = vector.load %arg3[%c5, %c0_19, %c0_20] : memref<9x8x16xbf16, #tpu.memory_space<vmem>>, vector<1x8x16xbf16>
    %45 = vector.shape_cast %44 : vector<1x8x16xbf16> to vector<8x16xbf16>
    %cst_21 = arith.constant dense<0.000000e+00> : vector<192x16xf32>
    %46 = tpu.matmul %43, %45, %cst_21 {dimension_numbers = #tpu.dot_dimension_numbers<[1], [0], [0], [1], [0, 0, 1, 1], [], []>} : vector<192x8xbf16>, vector<8x16xbf16>, vector<192x16xf32> -> vector<192x16xf32>
    %47 = arith.addf %41, %46 : vector<192x16xf32>
    %c2_i32 = arith.constant 2 : i32
    %48 = arith.addi %0, %c2_i32 : i32
    %c24_i32_22 = arith.constant 24 : i32
    %49 = arith.muli %48, %c24_i32_22 : i32
    %50 = tpu.assume_multiple %49, 8 : i32
    %c0_23 = arith.constant 0 : index
    %51 = arith.index_cast %50 : i32 to index
    %c0_24 = arith.constant 0 : index
    %52 = vector.load %arg2[%c0_23, %51, %c0_24] : memref<1x456x8xf32, #tpu.memory_space<vmem>>, vector<1x200x8xf32>
    %53 = vector.shape_cast %52 : vector<1x200x8xf32> to vector<200x8xf32>
    %54 = vector.extract_strided_slice %53 {offsets = [0, 0], sizes = [192, 8], strides = [1, 1]} : vector<200x8xf32> to vector<192x8xf32>
    %55 = arith.truncf %54 : vector<192x8xf32> to vector<192x8xbf16>
    %c6 = arith.constant 6 : index
    %c0_25 = arith.constant 0 : index
    %c0_26 = arith.constant 0 : index
    %56 = vector.load %arg3[%c6, %c0_25, %c0_26] : memref<9x8x16xbf16, #tpu.memory_space<vmem>>, vector<1x8x16xbf16>
    %57 = vector.shape_cast %56 : vector<1x8x16xbf16> to vector<8x16xbf16>
    %cst_27 = arith.constant dense<0.000000e+00> : vector<192x16xf32>
    %58 = tpu.matmul %55, %57, %cst_27 {dimension_numbers = #tpu.dot_dimension_numbers<[1], [0], [0], [1], [0, 0, 1, 1], [], []>} : vector<192x8xbf16>, vector<8x16xbf16>, vector<192x16xf32> -> vector<192x16xf32>
    %59 = arith.addf %47, %58 : vector<192x16xf32>
    %60 = vector.extract_strided_slice %53 {offsets = [1, 0], sizes = [192, 8], strides = [1, 1]} : vector<200x8xf32> to vector<192x8xf32>
    %61 = arith.truncf %60 : vector<192x8xf32> to vector<192x8xbf16>
    %c7 = arith.constant 7 : index
    %c0_28 = arith.constant 0 : index
    %c0_29 = arith.constant 0 : index
    %62 = vector.load %arg3[%c7, %c0_28, %c0_29] : memref<9x8x16xbf16, #tpu.memory_space<vmem>>, vector<1x8x16xbf16>
    %63 = vector.shape_cast %62 : vector<1x8x16xbf16> to vector<8x16xbf16>
    %cst_30 = arith.constant dense<0.000000e+00> : vector<192x16xf32>
    %64 = tpu.matmul %61, %63, %cst_30 {dimension_numbers = #tpu.dot_dimension_numbers<[1], [0], [0], [1], [0, 0, 1, 1], [], []>} : vector<192x8xbf16>, vector<8x16xbf16>, vector<192x16xf32> -> vector<192x16xf32>
    %65 = arith.addf %59, %64 : vector<192x16xf32>
    %66 = vector.extract_strided_slice %53 {offsets = [2, 0], sizes = [192, 8], strides = [1, 1]} : vector<200x8xf32> to vector<192x8xf32>
    %67 = arith.truncf %66 : vector<192x8xf32> to vector<192x8xbf16>
    %c8 = arith.constant 8 : index
    %c0_31 = arith.constant 0 : index
    %c0_32 = arith.constant 0 : index
    %68 = vector.load %arg3[%c8, %c0_31, %c0_32] : memref<9x8x16xbf16, #tpu.memory_space<vmem>>, vector<1x8x16xbf16>
    %69 = vector.shape_cast %68 : vector<1x8x16xbf16> to vector<8x16xbf16>
    %cst_33 = arith.constant dense<0.000000e+00> : vector<192x16xf32>
    %70 = tpu.matmul %67, %69, %cst_33 {dimension_numbers = #tpu.dot_dimension_numbers<[1], [0], [0], [1], [0, 0, 1, 1], [], []>} : vector<192x8xbf16>, vector<8x16xbf16>, vector<192x16xf32> -> vector<192x16xf32>
    %71 = arith.addf %65, %70 : vector<192x16xf32>
    %c0_34 = arith.constant 0 : index
    %c0_35 = arith.constant 0 : index
    %72 = vector.load %arg4[%c0_34, %c0_35] : memref<1x16xf32, #tpu.memory_space<vmem>>, vector<1x16xf32>
    %73 = vector.broadcast %72 : vector<1x16xf32> to vector<192x16xf32>
    %74 = arith.addf %71, %73 : vector<192x16xf32>
    %cst_36 = arith.constant 0.000000e+00 : f32
    %75 = vector.broadcast %cst_36 : f32 to vector<192x16xf32>
    %76 = arith.maximumf %74, %75 : vector<192x16xf32>
    %77 = vector.shape_cast %76 : vector<192x16xf32> to vector<8x24x16xf32>
    %78 = vector.extract_strided_slice %77 {offsets = [0, 0, 0], sizes = [8, 16, 16], strides = [1, 1, 1]} : vector<8x24x16xf32> to vector<8x16x16xf32>
    %c0_37 = arith.constant 0 : index
    %c0_38 = arith.constant 0 : index
    %c0_39 = arith.constant 0 : index
    %c0_40 = arith.constant 0 : index
    %79 = vector.load %arg5[%c0_37, %c0_38, %c0_39, %c0_40] : memref<1x8x16x16xf32, #tpu.memory_space<vmem>>, vector<1x8x16x16xf32>
    %80 = vector.shape_cast %79 : vector<1x8x16x16xf32> to vector<8x16x16xf32>
    %81 = vector.shape_cast %78 : vector<8x16x16xf32> to vector<1x8x16x16xf32>
    tpu.vector_store %arg5[%c0_37, %c0_38, %c0_39, %c0_40], %81 {strides = array<i32>} : memref<1x8x16x16xf32, #tpu.memory_space<vmem>>, vector<1x8x16x16xf32>,
    return
  }
  func.func @transform_0(%arg0: i32, %arg1: i32) -> (i32, i32, i32) {
    %c0_i32 = arith.constant 0 : i32
    %c0_i32_0 = arith.constant 0 : i32
    %c0_i32_1 = arith.constant 0 : i32
    return %arg0, %c0_i32, %c0_i32_0 : i32, i32, i32
  }
  func.func @transform_1(%arg0: i32, %arg1: i32) -> (i32, i32, i32) {
    %c0_i32 = arith.constant 0 : i32
    %c0_i32_0 = arith.constant 0 : i32
    %c0_i32_1 = arith.constant 0 : i32
    %c0_i32_2 = arith.constant 0 : i32
    return %c0_i32, %c0_i32_0, %c0_i32_1 : i32, i32, i32
  }
  func.func @transform_2(%arg0: i32, %arg1: i32) -> (i32, i32) {
    %c0_i32 = arith.constant 0 : i32
    %c0_i32_0 = arith.constant 0 : i32
    %c0_i32_1 = arith.constant 0 : i32
    return %c0_i32, %c0_i32_0 : i32, i32
  }
  func.func @transform_3(%arg0: i32, %arg1: i32) -> (i32, i32, i32, i32) {
    %c0_i32 = arith.constant 0 : i32
    %c0_i32_0 = arith.constant 0 : i32
    %c0_i32_1 = arith.constant 0 : i32
    return %arg0, %arg1, %c0_i32, %c0_i32_0 : i32, i32, i32, i32
  }
}

</mosaic_0001>

<bundles_post_ra>
// kernel: tpu_custom_call.1
= control target key start
LH: loop header
LB: loop body
LE: loop exit
PB: predicated region body
PF: predicated region fallthrough
CT: control target
= control target key end

     0   :  { %8 = vsyncpa [#allocation3], 0  ;;  %s3058_s0 = inlined_call_operand.vmem [shape: f32[1,456,8], index: 0, kind: input, shape index: {}]   ;;  %s3059_s1 = inlined_call_operand.vmem [shape: bf16[9,8,16], index: 1, kind: input, shape index: {}]   ;;  %s3060_s2 = inlined_call_operand.vmem [shape: f32[1,16], index: 2, kind: input, shape index: {}]   ;;  %s3061_s3 = inlined_call_operand.hbm [shape: f32[1,16,16,16], index: 3, kind: output, shape index: {}]  }
   0x1   :  { %10 = vsyncpa [#allocation3 + $0x1], 0  ;;  %s2224_s12 = smov 0   ;;  %s2226_s13 = smov 0  }
   0x2   :  { %s2228_s14 = smov 0   ;;  %s2230_s15 = smov 0  }
   0x3   :  { %s2232_s16 = smov 0   ;;  %s2234_s17 = smov 0  }
   0x4 LB: > { %s1877_s18 = sadd.s32 4294967295, %s2200_s17   ;;  %s1878_s19 = sadd.s32 4294967294, %s2200_s17   ;;  %s2200_s17 = sphi %s2234_s17, %s16_s17   ;;  %s2196_s16 = sphi %s2232_s16, %s3097_s16   ;;  %s2192_s15 = sphi %s2230_s15, %s3096_s15   ;;  %s2188_s14 = sphi %s2228_s14, %s3095_s14   ;;  %s2184_s13 = sphi %s2226_s13, %s3094_s13   ;;  %s2180_s12 = sphi %s2224_s12, %s3093_s12  }
   0x5   : > { %s25_s20 = sadd.s32 1, %s2196_s16  ;;  %s105_s21 = sadd.s32 1, %s2188_s14 }
   0x6   : > { %p26_p0 = scmp.ge.s32.totalorder %s25_s20, 2  ;;  %p115_p1 = scmp.ne.s32.totalorder %s2188_s14, %s2184_s13 }
   0x7   : > { %p116_p2 = scmp.eq.s32.totalorder %s1877_s18, 1  ;;  %p121_p3 = scmp.ne.s32.totalorder %s2184_s13, %s2180_s12 }
   0x8   : > { %s3099_s20 = smov (%p26_p0, %s25_s20), 0  ;;  %p122_p5 = scmp.eq.s32.totalorder %s1878_s19, 1 }
   0x9   : > { %p2264_p4 = por %p116_p2, %p115_p1  ;;  %s101_s23 = ssub.s32 %s2196_s16, %s3099_s20 }
   0xa   : > { %p1881_p6 = scmp.ge.s32.totalorder %s2200_s17, 1  ;;  %p103_p7 = scmp.eq.s32.totalorder %s101_s23, 0 }
   0xb   : > { %p2271_p8 = por %p122_p5, %p121_p3  ;;  %p154_p9 = scmp.lt.s32.totalorder %s2200_s17, 3 }
   0xc   : > { %s2277_s25 = scalar_select %p103_p7, %s2188_s14, %s105_s21  }
   0xd   : > { %p155_p10 = pnand %p1881_p6, %p154_p9 }
   0xf   : > { %158 = sbr.rel (%p155_p10) target bundleno = 597 (0x255), region = 32 }
  0x14   : > { %v1883_v0 = vld [vmem:[%s3059_s1 + $0x4] sm:$0xf]  ;;  %vm367_vm0 = vcmask 1043456   ;;  %s186_s28 = smul.u32 192, %s2192_s15  ;;  %v1908_v2 = vld [vmem:[%s3059_s1 + $0x8] sm:$0xf] }
  0x15   : > { %v369_v1 = vsel %vm367_vm0, %v1883_v0, 0  ;;  %v1948_v3 = vld [vmem:[%s3059_s1 + $0xc] sm:$0xf]  ;;  %v598_v4 = vsel %vm367_vm0, %v1908_v2, 0  ;;  %v225_v6 = vld [vmem:[%s3059_s1] sm:$0xf] }
  0x16   : > { %2061 = vmatpush.bf16.msra.mxu1 %v369_v1  ;;  %2062 = vmatpush.bf16.msra.mxu2 %v369_v1  ;;  %s2293_s8 = scalar_lea.vmem %s3058_s0, %s186_s28  ;;  %v756_v5 = vsel %vm367_vm0, %v1948_v3, 0  ;;  %v1961_v7 = vld [vmem:[%s3059_s1 + $0x10] sm:$0xf]  ;;  %v457_v11 = vsel %vm367_vm0, %v225_v6, 0  ;;  %vm229_vm1 = vsmask.f32 7424 }
  0x17   : > { %2063 = vmatpush.bf16.msra.mxu3 %v369_v1  ;;  %378 = vmatpush.bf16.msra.mxu0 %v369_v1  ;;  %v2304_v8 = vld [vmem:[%s2293_s8 + $0x30] sm:$0xff]  ;;  %v2307_v9 = vld [vmem:[%s2293_s8 + $0x38] sm:$0xff]  ;;  %v2310_v10 = vld [vmem:[%s2293_s8 + $0x40] sm:$0xff]  ;;  %v963_v12 = vsel %vm367_vm0, %v1961_v7, 0  ;;  %vm330_vm2 = vcmask 64512   ;;  %vm535_vm3 = vcmask 1046528  }
  0x18   : > { %v2315_v13 = vld [vmem:[%s2293_s8 + $0x48] sm:$0xff]  ;;  %v2319_v14 = vpack.c.bf16 %v2307_v9, %v2304_v8  ;;  %v2322_v15 = vld [vmem:[%s2293_s8 + $0x60] sm:$0xff]  ;;  %v2332_v18 = vld [vmem:[%s2293_s8 + $0x70] sm:$0xff]  ;;  %s175_s4 = sand.u32 1, %s2184_s13   ;;  %vm1755_vm4 = vcmask 130048   ;;  %s2142_s29 = scalar_lea.hbm %s3061_s3, 256 }
  0x19   : > { %v2325_v16 = vld [vmem:[%s2293_s8 + $0x68] sm:$0xff]  ;;  %v2329_v17 = vpack.c.bf16 %v2315_v13, %v2310_v10  ;;  %v2335_v19 = vld [vmem:[%s2293_s8 + $0x78] sm:$0xff]  ;;  %v2342_v21 = vld [vmem:[%s2293_s8 + $0x90] sm:$0xff]  ;;  %s1882_s7 = sshll.u32 %s175_s4, 7 }
  0x1a   : > { %607 = vmatpush.bf16.msrb.mxu2 %v598_v4  ;;  %v2339_v20 = vpack.c.bf16 %v2325_v16, %v2322_v15  ;;  %466 = vmatpush.bf16.msrb.mxu1 %v457_v11  ;;  %v254_v22 = vshll.u32 %v2319_v14, 16  ;;  %v258_v23 = vshrl.u32 %v2319_v14, 16  ;;  %v2348_v24 = vpack.c.bf16 %v2335_v19, %v2332_v18  ;;  %v2351_v25 = vld [vmem:[%s2293_s8 + $0x98] sm:$0xff]  ;;  %v2354_v26 = vld [vmem:[%s2293_s8 + $0xa0] sm:$0xff]  ;;  %v2357_v27 = vld [vmem:[%s2293_s8 + $0xa8] sm:$0xff]  ;;  %s2929_s9 = scalar_lea.vmem [#allocation2], %s1882_s7 }
  0x1b   : > { %765 = vmatpush.bf16.msrb.mxu3 %v756_v5  ;;  %972 = vmatpush.bf16.msrb.mxu0 %v963_v12  ;;  %v262_v28 = vshll.u32 %v2329_v17, 16  ;;  %v2364_v31 = vpack.c.bf16 %v2351_v25, %v2342_v21  ;;  %v188_v32 = vld [vmem:[%s2293_s8] sm:$0xff]  ;;  %v189_v33 = vld [vmem:[%s2293_s8 + $0x8] sm:$0xff]  ;;  %v190_v34 = vld [vmem:[%s2293_s8 + $0x10] sm:$0xff]  ;;  %v2374_v37 = vpack.c.bf16 %v2357_v27, %v2354_v26  ;;  %v266_v12 = vshrl.u32 %v2329_v17, 16  ;;  %s1788_s19 = sshll.u32 %s2929_s9, 4  ;;  %s1789_s19 = int_to_ptr.vmem [resolvable:$true] %s1788_s19 }
  0x1c   : > { %v278_v29 = vshll.u32 %v2339_v20, 16  ;;  %v282_v30 = vshrl.u32 %v2339_v20, 16  ;;  %v2369_v35 = vrot.slane %v254_v22, 1  ;;  %v286_v36 = vshll.u32 %v2348_v24, 16  ;;  %v2377_v38 = vld [vmem:[%s2293_s8 + $0x18] sm:$0xff]  ;;  %v2396_v52 = vld [vmem:[%s2293_s8 + $0x50] sm:$0xff] }
  0x1d   : > { %v2379_v39 = vpack.c.bf16 %v189_v33, %v188_v32  ;;  %v264_v40 = vrot.slane %v262_v28, 1  ;;  %v302_v42 = vshll.u32 %v2364_v31, 16  ;;  %v306_v43 = vshrl.u32 %v2364_v31, 16  ;;  %v2399_v53 = vld [vmem:[%s2293_s8 + $0x58] sm:$0xff]  ;;  %v2406_v57 = vld [vmem:[%s2293_s8 + $0x80] sm:$0xff]  ;;  %v2409_v58 = vld [vmem:[%s2293_s8 + $0x88] sm:$0xff] }
  0x1e   : > { %v2381_v41 = vrot.slane %v278_v29, 1  ;;  %v260_v44 = vor.u32 %v258_v23, %v2369_v35  ;;  %v288_v45 = vrot.slane %v286_v36, 1  ;;  %v310_v46 = vshll.u32 %v2374_v37, 16  ;;  %v2426_v0 = vld [vmem:[%s2293_s8 + $0xb0] sm:$0xff]  ;;  %v2429_v1 = vld [vmem:[%s2293_s8 + $0xb8] sm:$0xff]  ;;  %v192_v5 = vld [vmem:[%s2293_s8 + $0x20] sm:$0xff] }
  0x1f   : > { %v2388_v47 = vpack.c.bf16 %v2377_v38, %v190_v34  ;;  %v2391_v49 = vrot.slane %v302_v42, 1  ;;  %v231_v50 = vshrl.u32 %v2379_v39, 16  ;;  %v233_v51 = vshll.u32 %v2379_v39, 16  ;;  %v2440_v6 = vld [vmem:[%s2293_s8 + $0x28] sm:$0xff] }
  0x20   : > { %v284_v48 = vor.u32 %v282_v30, %v2381_v41  ;;  %v2402_v54 = vsel %vm229_vm1, %v260_v44, %v264_v40  ;;  %v312_v55 = vrot.slane %v310_v46, 1  ;;  %v2423_v63 = vpack.c.bf16 %v2399_v53, %v2396_v52 }
  0x21   : > { %v238_v56 = vshll.u32 %v2388_v47, 16  ;;  %1887 = vmatmul.msk.bf16.vlgmr.msra.gmra.mxu1 %vm330_vm2, %v2402_v54  ;;  %v2417_v60 = vor.u32 %v306_v43, %v2391_v49  ;;  %v235_v61 = vrot.slane %v233_v51, 1  ;;  %v2435_v4 = vpack.c.bf16 %v2409_v58, %v2406_v57 }
  0x22   : > { %v2414_v59 = vsel %vm229_vm1, %v284_v48, %v288_v45  ;;  %v2445_v11 = vpack.c.bf16 %v2429_v1, %v2426_v0  ;;  %v270_v22 = vshll.u32 %v2423_v63, 16  ;;  %v290_v23 = vshrl.u32 %v2348_v24, 16 }
  0x23   : > { %1890 = vmatmul.msk.bf16.vlgmr.msra.gmra.mxu2 %vm330_vm2, %v2414_v59  ;;  %v240_v62 = vrot.slane %v238_v56, 1  ;;  %v313_v2 = vsel %vm229_vm1, %v2417_v60, %v312_v55  ;;  %v236_v3 = vor.u32 %v235_v61, %v231_v50  ;;  %v294_v28 = vshll.u32 %v2435_v4, 16 }
  0x24   : > { %1893 = vmatmul.msk.bf16.vlgmr.msra.gmra.mxu3 %vm330_vm2, %v313_v2  ;;  %v2453_v29 = vpack.c.bf16 %v2440_v6, %v192_v5  ;;  %v314_v30 = vshrl.u32 %v2374_v37, 16  ;;  %v318_v32 = vshll.u32 %v2445_v11, 16  ;;  %v268_v33 = vor.u32 %v266_v12, %v264_v40  ;;  %v2027_v12 = vld [vmem:[%s3059_s1 + $0x1c] sm:$0xf] }
  0x25   : > { %v241_v7 = vsel %vm229_vm1, %v236_v3, %v240_v62  ;;  %v272_v34 = vrot.slane %v270_v22, 1  ;;  %v292_v36 = vor.u32 %v290_v23, %v288_v45  ;;  %v296_v42 = vrot.slane %v294_v28, 1  ;;  %v2474_v45 = vld [vmem:[%s2293_s8 + $0xc0] sm:$0xff]  ;;  %v1974_v22 = vld [vmem:[%s3059_s1 + $0x14] sm:$0xf] }
  0x26   : > { %1884 = vmatmul.msk.bf16.vlgmr.msra.gmra.mxu0 %vm330_vm2, %v241_v7  ;;  %v242_v43 = vshrl.u32 %v2388_v47, 16  ;;  %v246_v44 = vshll.u32 %v2453_v29, 16  ;;  %v316_v46 = vor.u32 %v314_v30, %v312_v55  ;;  %v2459_v48 = vrot.slane %v318_v32, 1  ;;  %v2040_v23 = vld [vmem:[%s3059_s1 + $0x20] sm:$0xf] }
  0x27   : > { %v2462_v50 = vsel %vm229_vm1, %v268_v33, %v272_v34  ;;  %v2465_v51 = vsel %vm229_vm1, %v292_v36, %v296_v42  ;;  %v274_v2 = vshrl.u32 %v2423_v63, 16  ;;  %v2484_v3 = vpack.c.bf16 %v2474_v45, %v2474_v45 }
  0x28   : > { %3071 = vst [vmem:[#allocation5_spill] sm:$0xff] %v2459_v48  ;;  %v244_v56 = vor.u32 %v242_v43, %v240_v62  ;;  %v248_v61 = vrot.slane %v246_v44, 1  ;;  %v321_v40 = vsel %vm229_vm1, %v316_v46, %v2459_v48  ;;  %v2014_v62 = vld [vmem:[%s3059_s1 + $0x18] sm:$0xf]  ;;  %v298_v28 = vshrl.u32 %v2435_v4, 16 }
  0x29   : > { %v1277_v7 = vsel %vm367_vm0, %v2014_v62, 0  ;;  %v1484_v30 = vsel %vm367_vm0, %v2027_v12, 0  ;;  %v1119_v32 = vsel %vm367_vm0, %v1974_v22, 0  ;;  %v1640_v33 = vsel %vm367_vm0, %v2040_v23, 0 }
  0x2a   : > { %v249_v55 = vsel %vm229_vm1, %v244_v56, %v248_v61  ;;  %1286 = vmatpush.bf16.msra.mxu2 %v1277_v7  ;;  %1493 = vmatpush.bf16.msra.mxu3 %v1484_v30  ;;  %v322_v36 = vshrl.u32 %v2445_v11, 16  ;;  %v326_v43 = vshll.u32 %v2484_v3, 16  ;;  %v276_v44 = vor.u32 %v274_v2, %v272_v34 }
  0x2b   : > { %1128 = vmatpush.bf16.msra.mxu1 %v1119_v32  ;;  %1649 = vmatpush.bf16.msra.mxu0 %v1640_v33  ;;  %v300_v46 = vor.u32 %v298_v28, %v296_v42  ;;  %v250_v56 = vshrl.u32 %v2453_v29, 16  ;;  %v2517_v22 = vpack.c.bf16 %v2310_v10, %v2307_v9  ;;  %v2534_v9 = vpack.c.bf16 %v2304_v8, %v2440_v6 }
  0x2c   : > { %v2509_v62 = vsel %vm229_vm1, %v276_v44, %v2381_v41  ;;  %v536_v42 = vrot.slane %v2379_v39, 1  ;;  %v2544_v8 = vpack.c.bf16 %v2396_v52, %v2315_v13  ;;  %v539_v30 = vrot.slane %v2453_v29, 1 }
  0x2d   : > { %v2513_v7 = vsel %vm229_vm1, %v300_v46, %v2391_v49  ;;  %v252_v12 = vor.u32 %v250_v56, %v248_v61  ;;  %v2528_v49 = vpack.c.bf16 %v192_v5, %v2377_v38  ;;  %v537_v61 = vrot.slane %v2388_v47, 1 }
  0x2e   : > { %v844_v38 = vshll.u32 %v2534_v9, 16  ;;  %v848_v32 = vshrl.u32 %v2534_v9, 16  ;;  %v851_v33 = vshll.u32 %v2517_v22, 16  ;;  %v855_v44 = vshrl.u32 %v2517_v22, 16 }
  0x2f   : > { %v257_v41 = vsel %vm229_vm1, %v252_v12, %v2369_v35  ;;  %v840_v10 = vshll.u32 %v2528_v49, 16  ;;  %v838_v2 = vshrl.u32 %v2528_v49, 16  ;;  %v538_v5 = vsel %vm535_vm3, %v536_v42, %v537_v61 }
  0x30   : > { %v846_v28 = vrot.slane %v844_v38, 1  ;;  %v540_v13 = vsel %vm535_vm3, %v537_v61, %v539_v30  ;;  %v858_v46 = vshll.u32 %v2544_v8, 16 }
  0x31   : > { %1888 = vmatmul.msk.bf16.gmra.mxu1 %vm330_vm2, %v2462_v50  ;;  %v842_v35 = vrot.slane %v840_v10, 1  ;;  %v862_v10 = vshrl.u32 %v2544_v8, 16 }
  0x32   : > { %v850_v52 = vor.u32 %v848_v32, %v846_v28  ;;  %v860_v12 = vrot.slane %v858_v46, 1 }
  0x33   : > { %1891 = vmatmul.msk.bf16.gmra.mxu2 %vm330_vm2, %v2465_v51  ;;  %v843_v23 = vor.u32 %v842_v35, %v838_v2  ;;  %v545_v35 = vrot.slane %v2423_v63, 1 }
  0x34   : > { %1894 = vmatmul.msk.bf16.gmra.mxu3 %vm330_vm2, %v321_v40  ;;  %v2505_v40 = vor.u32 %v322_v36, %v2459_v48  ;;  %v853_v36 = vrot.slane %v851_v33, 1  ;;  %v864_v61 = vor.u32 %v862_v10, %v860_v12 }
  0x35   : > { %v847_v6 = vsel %vm229_vm1, %v843_v23, %v846_v28 }
  0x36   : > { %1885 = vmatmul.msk.bf16.gmra.mxu0 %vm330_vm2, %v249_v55  ;;  %3072 = vst [vmem:[#allocation6_spill] sm:$0xff] %v2505_v40  ;;  %v328_v55 = vrot.slane %v326_v43, 1  ;;  %v541_v43 = vrot.slane %v2319_v14, 1 }
  0x38   : > { %v329_v34 = vsel %vm229_vm1, %v2505_v40, %v328_v55  ;;  %v542_v56 = vsel %vm535_vm3, %v539_v30, %v541_v43  ;;  %v857_v55 = vor.u32 %v855_v44, %v853_v36  ;;  %v547_v30 = vrot.slane %v2339_v20, 1 }
  0x41   : > { %1889 = vmatmul.msk.bf16.gmra.mxu1 %vm330_vm2, %v2509_v62 }
  0x43   : > { %1892 = vmatmul.msk.bf16.gmra.mxu2 %vm330_vm2, %v2513_v7 }
  0x44   : > { %1895 = vmatmul.msk.bf16.gmra.mxu3 %vm330_vm2, %v329_v34  ;;  %v2577_v34 = vpack.c.bf16 %v2322_v15, %v2399_v53  ;;  %v2595_v53 = vpack.c.bf16 %v2332_v18, %v2325_v16  ;;  %v2613_v18 = vpack.c.bf16 %v2406_v57, %v2335_v19 }
  0x46   : > { %1886 = vmatmul.msk.bf16.gmra.mxu0 %vm330_vm2, %v257_v41  ;;  %v543_v41 = vrot.slane %v2329_v17, 1  ;;  %v865_v42 = vshll.u32 %v2577_v34, 16  ;;  %v869_v38 = vshrl.u32 %v2577_v34, 16  ;;  %v876_v32 = vshrl.u32 %v2595_v53, 16 }
  0x47   : > { %v879_v33 = vshll.u32 %v2613_v18, 16 }
  0x48   : > { %v867_v2 = vrot.slane %v865_v42, 1  ;;  %v2601_v23 = vsel %vm535_vm3, %v543_v41, %v545_v35 }
  0x4a   : > { %v868_v15 = vsel %vm229_vm1, %v864_v61, %v867_v2  ;;  %v871_v28 = vor.u32 %v869_v38, %v867_v2 }
  0x51   : > { %1896 = vmatmul.msk.bf16.vlgmr.msrb.gmra.mxu1 %vm330_vm2, %v2379_v39  ;;  %v854_v39 = vsel %vm229_vm1, %v850_v52, %v853_v36  ;;  %v2621_v52 = vsel %vm535_vm3, %v545_v35, %v547_v30 }
  0x53   : > { %1909 = vmatmul.msk.bf16.vlgmr.msrb.gmra.mxu2 %vm330_vm2, %v538_v5  ;;  %v872_v5 = vshll.u32 %v2595_v53, 16 }
  0x54   : > { %1949 = vmatmul.msk.bf16.vlgmr.msrb.gmra.mxu3 %vm330_vm2, %v2528_v49 }
  0x56   : > { %1962 = vmatmul.msk.bf16.vlgmr.msrb.gmra.mxu0 %vm330_vm2, %v847_v6  ;;  %v874_v6 = vrot.slane %v872_v5, 1 }
  0x58   : > { %v875_v16 = vsel %vm229_vm1, %v871_v28, %v874_v6  ;;  %v878_v36 = vor.u32 %v876_v32, %v874_v6  ;;  %v2663_v6 = vpack.c.bf16 %v2354_v26, %v2351_v25 }
  0x5a   : > { %3073 = vst [vmem:[#allocation7_spill] sm:$0xff] %v2663_v6 }
  0x61   : > { %1897 = vmatmul.msk.bf16.gmra.mxu1 %vm330_vm2, %v2388_v47  ;;  %v861_v47 = vsel %vm229_vm1, %v857_v55, %v860_v12  ;;  %v549_v12 = vrot.slane %v2348_v24, 1 }
  0x63   : > { %1910 = vmatmul.msk.bf16.gmra.mxu2 %vm330_vm2, %v540_v13  ;;  %v2649_v2 = vsel %vm535_vm3, %v547_v30, %v549_v12  ;;  %v551_v30 = vrot.slane %v2435_v4, 1 }
  0x64   : > { %1950 = vmatmul.msk.bf16.gmra.mxu3 %vm330_vm2, %v2534_v9 }
  0x66   : > { %1963 = vmatmul.msk.bf16.gmra.mxu0 %vm330_vm2, %v854_v39  ;;  %v881_v39 = vrot.slane %v879_v33, 1  ;;  %v893_v33 = vshll.u32 %v2663_v6, 16 }
  0x68   : > { %v882_v57 = vsel %vm229_vm1, %v878_v36, %v881_v39  ;;  %v895_v25 = vrot.slane %v893_v33, 1 }
  0x71   : > { %1898 = vmatmul.msk.bf16.gmra.mxu1 %vm330_vm2, %v2453_v29  ;;  %v2583_v29 = vsel %vm535_vm3, %v541_v43, %v543_v41 }
  0x73   : > { %1911 = vmatmul.msk.bf16.gmra.mxu2 %vm330_vm2, %v542_v56  ;;  %v2639_v56 = vpack.c.bf16 %v2342_v21, %v2409_v58 }
  0x74   : > { %1951 = vmatmul.msk.bf16.gmra.mxu3 %vm330_vm2, %v2517_v22 }
  0x75   : > { %v886_v41 = vshll.u32 %v2639_v56, 16  ;;  %v890_v32 = vshrl.u32 %v2639_v56, 16 }
  0x76   : > { %1964 = vmatmul.msk.bf16.gmra.mxu0 %vm330_vm2, %v861_v47  ;;  %v883_v47 = vshrl.u32 %v2613_v18, 16 }
  0x77   : > { %v888_v35 = vrot.slane %v886_v41, 1 }
  0x79   : > { %v892_v41 = vor.u32 %v890_v32, %v888_v35 }
  0x81   : > { %1899 = vmatmul.msk.bf16.gmra.mxu1 %vm330_vm2, %v2319_v14 }
  0x83   : > { %1912 = vmatmul.msk.bf16.gmra.mxu2 %vm330_vm2, %v2583_v29 }
  0x84   : > { %1952 = vmatmul.msk.bf16.gmra.mxu3 %vm330_vm2, %v2544_v8 }
  0x86   : > { %1965 = vmatmul.msk.bf16.gmra.mxu0 %vm330_vm2, %v868_v15  ;;  %v885_v15 = vor.u32 %v883_v47, %v881_v39  ;;  %v2677_v47 = vsel %vm535_vm3, %v549_v12, %v551_v30 }
  0x88   : > { %v889_v58 = vsel %vm229_vm1, %v885_v15, %v888_v35 }
  0x91   : > { %1900 = vmatmul.msk.bf16.gmra.mxu1 %vm330_vm2, %v2329_v17 }
  0x93   : > { %1913 = vmatmul.msk.bf16.gmra.mxu2 %vm330_vm2, %v2601_v23 }
  0x94   : > { %1953 = vmatmul.msk.bf16.gmra.mxu3 %vm330_vm2, %v2577_v34 }
  0x96   : > { %1966 = vmatmul.msk.bf16.gmra.mxu0 %vm330_vm2, %v875_v16 }
  0x9e   : > { %v2618_v13 = vpop.f32.mrf.mxu1 }
  0xa1   : > { %1901 = vmatmul.msk.bf16.gmra.mxu1 %vm330_vm2, %v2423_v63 }
  0xa3   : > { %1914 = vmatmul.msk.bf16.gmra.mxu2 %vm330_vm2, %v2621_v52  ;;  %v380_v19 = vpop.f32.mrf.mxu0 }
  0xa4   : > { %1954 = vmatmul.msk.bf16.gmra.mxu3 %vm330_vm2, %v2595_v53 }
  0xa6   : > { %v2630_v43 = vpop.f32.mrf.mxu2  ;;  %1967 = vmatmul.msk.bf16.gmra.mxu0 %vm330_vm2, %v882_v57  ;;  %v2633_v44 = vpop.f32.mrf.mxu1 }
  0xa7   : > { %v2635_v46 = vpop.f32.mrf.mxu3 }
  0xab   : > { %v382_v55 = vpop.f32.mrf.mxu0 }
  0xae   : > { %v2644_v10 = vpop.f32.mrf.mxu2  ;;  %v398_v42 = vpop.f32.mrf.mxu1 }
  0xaf   : > { %v2646_v61 = vpop.f32.mrf.mxu3  ;;  %v896_v42 = vsel %vm229_vm1, %v892_v41, %v895_v25 }
  0xb1   : > { %1902 = vmatmul.msk.bf16.gmra.mxu1 %vm330_vm2, %v2339_v20 }
  0xb3   : > { %1915 = vmatmul.msk.bf16.gmra.mxu2 %vm330_vm2, %v2649_v2  ;;  %v385_v21 = vpop.f32.mrf.mxu0 }
  0xb4   : > { %1955 = vmatmul.msk.bf16.gmra.mxu3 %vm330_vm2, %v2613_v18  ;;  %v2695_v21 = vpack.c.bf16 %v2426_v0, %v2357_v27 }
  0xb6   : > { %v411_v38 = vpop.f32.mrf.mxu2  ;;  %1968 = vmatmul.msk.bf16.gmra.mxu0 %vm330_vm2, %v889_v58  ;;  %v2659_v5 = vpop.f32.mrf.mxu1  ;;  %3076 = vst [vmem:[#allocation10_spill] sm:$0xff] %v2695_v21  ;;  %v900_v32 = vshll.u32 %v2695_v21, 16 }
  0xb7   : > { %v424_v28 = vpop.f32.mrf.mxu3  ;;  %v2698_v38 = vrot.slane %v2364_v31, 1 }
  0xb8   : > { %v897_v28 = vshrl.u32 %v2663_v6, 16 }
  0xbb   : > { %v2665_v16 = vpop.f32.mrf.mxu0 }
  0xbe   : > { %v2670_v36 = vpop.f32.mrf.mxu2  ;;  %v2672_v39 = vpop.f32.mrf.mxu1 }
  0xbf   : > { %v2674_v57 = vpop.f32.mrf.mxu3 }
  0xc0   : > { %3074 = vst [vmem:[#allocation8_spill] sm:$0xff] %v2674_v57  ;;  %v904_v57 = vshrl.u32 %v2695_v21, 16 }
  0xc1   : > { %1903 = vmatmul.msk.bf16.gmra.mxu1 %vm330_vm2, %v2348_v24 }
  0xc3   : > { %1916 = vmatmul.msk.bf16.gmra.mxu2 %vm330_vm2, %v2677_v47  ;;  %v2683_v26 = vpop.f32.mrf.mxu0 }
  0xc4   : > { %1956 = vmatmul.msk.bf16.gmra.mxu3 %vm330_vm2, %v2639_v56 }
  0xc6   : > { %v2688_v15 = vpop.f32.mrf.mxu2  ;;  %1969 = vmatmul.msk.bf16.gmra.mxu0 %vm330_vm2, %v896_v42  ;;  %v404_v12 = vpop.f32.mrf.mxu1  ;;  %v2704_v42 = vsel %vm535_vm3, %v551_v30, %v2698_v38 }
  0xc7   : > { %v2691_v35 = vpop.f32.mrf.mxu3  ;;  %v899_v12 = vor.u32 %v897_v28, %v895_v25  ;;  %v2716_v28 = vpack.c.bf16 %v2474_v45, %v2429_v1 }
  0xc8   : > { %3075 = vst [vmem:[#allocation9_spill] sm:$0xff] %v2691_v35  ;;  %v902_v35 = vrot.slane %v900_v32, 1 }
  0xca   : > { %v903_v0 = vsel %vm229_vm1, %v899_v12, %v902_v35  ;;  %v555_v12 = vrot.slane %v2374_v37, 1 }
  0xcb   : > { %v391_v58 = vpop.f32.mrf.mxu0 }
  0xcc   : > { %v556_v1 = vsel %vm535_vm3, %v2698_v38, %v555_v12 }
  0xce   : > { %v417_v33 = vpop.f32.mrf.mxu2  ;;  %v468_v41 = vpop.f32.mrf.mxu1 }
  0xcf   : > { %v430_v40 = vpop.f32.mrf.mxu3  ;;  %v469_v48 = vadd.f32 %v468_v41, %v380_v19 }
  0xd1   : > { %1904 = vmatmul.msk.bf16.gmra.mxu1 %vm330_vm2, %v2435_v4 }
  0xd3   : > { %1917 = vmatmul.msk.bf16.gmra.mxu2 %vm330_vm2, %v2704_v42  ;;  %v974_v27 = vpop.f32.mrf.mxu0 }
  0xd4   : > { %1957 = vmatmul.msk.bf16.gmra.mxu3 %vm330_vm2, %v2663_v6  ;;  %v907_v6 = vshll.u32 %v2716_v28, 16 }
  0xd6   : > { %v609_v40 = vpop.f32.mrf.mxu2  ;;  %1970 = vmatmul.msk.bf16.gmra.mxu0 %vm330_vm2, %v903_v0  ;;  %v470_v30 = vpop.f32.mrf.mxu1 }
  0xd7   : > { %v661_v19 = vadd.f32 %v609_v40, %v469_v48  ;;  %v767_v58 = vpop.f32.mrf.mxu3  ;;  %v471_v25 = vadd.f32 %v470_v30, %v382_v55  ;;  %v906_v30 = vor.u32 %v904_v57, %v902_v35 }
  0xd9   : > { %v819_v32 = vadd.f32 %v767_v58, %v661_v19  ;;  %v909_v19 = vrot.slane %v907_v6, 1 }
  0xdb   : > { %v2718_v33 = vadd.f32 %v974_v27, %v819_v32  ;;  %v976_v41 = vpop.f32.mrf.mxu0 }
  0xdd   : > { %3077 = vst [vmem:[#allocation11_spill] sm:$0xff] %v2718_v33  ;;  %v910_v33 = vsel %vm229_vm1, %v906_v30, %v909_v19 }
  0xde   : > { %v611_v48 = vpop.f32.mrf.mxu2  ;;  %v473_v40 = vpop.f32.mrf.mxu1 }
  0xdf   : > { %v662_v0 = vadd.f32 %v611_v48, %v471_v25  ;;  %v769_v55 = vpop.f32.mrf.mxu3  ;;  %v2734_v25 = vld [vmem:[%s2293_s8 + $0xc8] sm:$0xff]  ;;  %v2737_v48 = vld [vmem:[%s2293_s8 + $0xd0] sm:$0xff] }
  0xe0   : > { %3079 = vst [vmem:[#allocation13_spill] sm:$0xff] %v2734_v25 }
  0xe1   : > { %v820_v27 = vadd.f32 %v769_v55, %v662_v0  ;;  %1905 = vmatmul.msk.bf16.gmra.mxu1 %vm330_vm2, %v2364_v31  ;;  %3080 = vst [vmem:[#allocation14_spill] sm:$0xff] %v2737_v48  ;;  %v2746_v55 = vrot.slane %v2445_v11, 1 }
  0xe3   : > { %1918 = vmatmul.msk.bf16.gmra.mxu2 %vm330_vm2, %v556_v1  ;;  %v2728_v58 = vadd.f32 %v976_v41, %v820_v27  ;;  %v979_v32 = vpop.f32.mrf.mxu0  ;;  %v2743_v41 = vpack.c.bf16 %v2737_v48, %v2734_v25  ;;  %v911_v1 = vshrl.u32 %v2716_v28, 16 }
  0xe4   : > { %1958 = vmatmul.msk.bf16.gmra.mxu3 %vm330_vm2, %v2695_v21 }
  0xe5   : > { %3078 = vst [vmem:[#allocation12_spill] sm:$0xff] %v2728_v58  ;;  %v914_v30 = vshll.u32 %v2743_v41, 16 }
  0xe6   : > { %v614_v57 = vpop.f32.mrf.mxu2  ;;  %1971 = vmatmul.msk.bf16.gmra.mxu0 %vm330_vm2, %v910_v33  ;;  %v474_v6 = vpop.f32.mrf.mxu1 }
  0xe7   : > { %v772_v35 = vpop.f32.mrf.mxu3  ;;  %v475_v0 = vadd.f32 %v474_v6, %v2665_v16  ;;  %v558_v16 = vsel %vm535_vm3, %v555_v12, %v2746_v55  ;;  %v913_v6 = vor.u32 %v911_v1, %v909_v19  ;;  %v916_v58 = vrot.slane %v914_v30, 1 }
  0xeb   : > { %v980_v40 = vpop.f32.mrf.mxu0 }
  0xee   : > { %v615_v27 = vpop.f32.mrf.mxu2  ;;  %v477_v33 = vpop.f32.mrf.mxu1 }
  0xef   : > { %v663_v32 = vadd.f32 %v615_v27, %v475_v0  ;;  %v773_v57 = vpop.f32.mrf.mxu3  ;;  %v478_v35 = vadd.f32 %v477_v33, %v2683_v26  ;;  %v917_v0 = vsel %vm229_vm1, %v913_v6, %v916_v58  ;;  %v2762_v26 = vld [vmem:[%s2293_s8 + $0xd8] sm:$0xff]  ;;  %v918_v33 = vshrl.u32 %v2743_v41, 16 }
  0xf1   : > { %v821_v48 = vadd.f32 %v773_v57, %v663_v32  ;;  %1906 = vmatmul.msk.bf16.gmra.mxu1 %vm330_vm2, %v2374_v37  ;;  %v2767_v37 = vpack.c.bf16 %v2762_v26, %v2762_v26  ;;  %v559_v32 = vrot.slane %v2484_v3, 1 }
  0xf3   : > { %1919 = vmatmul.msk.bf16.gmra.mxu2 %vm330_vm2, %v558_v16  ;;  %v2756_v21 = vadd.f32 %v980_v40, %v821_v48  ;;  %v983_v25 = vpop.f32.mrf.mxu0  ;;  %3081 = vst [vmem:[#allocation15_spill] sm:$0xff] %v2767_v37  ;;  %v922_v57 = vshll.u32 %v2767_v37, 16 }
  0xf4   : > { %1959 = vmatmul.msk.bf16.gmra.mxu3 %vm330_vm2, %v2716_v28 }
  0xf6   : > { %v618_v27 = vpop.f32.mrf.mxu2  ;;  %1972 = vmatmul.msk.bf16.gmra.mxu0 %vm330_vm2, %v917_v0  ;;  %v479_v19 = vpop.f32.mrf.mxu1 }
  0xf7   : > { %v664_v12 = vadd.f32 %v618_v27, %v478_v35  ;;  %v776_v1 = vpop.f32.mrf.mxu3  ;;  %v560_v35 = vsel %vm535_vm3, %v2746_v55, %v559_v32  ;;  %v920_v27 = vor.u32 %v918_v33, %v916_v58  ;;  %v924_v19 = vrot.slane %v922_v57, 1 }
  0xf8   : > { %v1057_v33 = vrot.slane %v2528_v49, 1  ;;  %v1058_v57 = vrot.slane %v2534_v9, 1 }
  0xf9   : > { %v822_v48 = vadd.f32 %v776_v1, %v664_v12  ;;  %v925_v3 = vsel %vm229_vm1, %v920_v27, %v924_v19 }
  0xfa   : > { %v1059_v19 = vsel %vm535_vm3, %v1057_v33, %v1058_v57 }
  0xfb   : > { %v2769_v40 = vadd.f32 %v983_v25, %v822_v48  ;;  %v985_v30 = vpop.f32.mrf.mxu0 }
  0xfe   : > { %v620_v16 = vpop.f32.mrf.mxu2  ;;  %v481_v6 = vpop.f32.mrf.mxu1 }
  0xff   : > { %v778_v0 = vpop.f32.mrf.mxu3  ;;  %v482_v12 = vadd.f32 %v481_v6, %v2618_v13 }
 0x101   : > { %1907 = vmatmul.msk.bf16.gmra.mxu1 %vm330_vm2, %v2445_v11 }
 0x103   : > { %1920 = vmatmul.msk.bf16.gmra.mxu2 %vm330_vm2, %v560_v35  ;;  %v987_v25 = vpop.f32.mrf.mxu0 }
 0x104   : > { %1960 = vmatmul.msk.bf16.gmra.mxu3 %vm330_vm2, %v2743_v41 }
 0x106   : > { %v622_v1 = vpop.f32.mrf.mxu2  ;;  %1973 = vmatmul.msk.bf16.gmra.mxu0 %vm330_vm2, %v925_v3  ;;  %v483_v30 = vpop.f32.mrf.mxu1 }
 0x107   : > { %v665_v48 = vadd.f32 %v622_v1, %v482_v12  ;;  %v780_v58 = vpop.f32.mrf.mxu3  ;;  %v484_v35 = vadd.f32 %v483_v30, %v2633_v44  ;;  %v1060_v1 = vrot.slane %v2517_v22, 1 }
 0x109   : > { %v823_v32 = vadd.f32 %v780_v58, %v665_v48 }
 0x10b   : > { %v2786_v16 = vadd.f32 %v987_v25, %v823_v32  ;;  %v989_v0 = vpop.f32.mrf.mxu0  ;;  %v1061_v32 = vsel %vm535_vm3, %v1058_v57, %v1060_v1 }
 0x10e   : > { %v624_v13 = vpop.f32.mrf.mxu2  ;;  %v486_v27 = vpop.f32.mrf.mxu1 }
 0x10f   : > { %v666_v6 = vadd.f32 %v624_v13, %v484_v35  ;;  %v782_v37 = vpop.f32.mrf.mxu3  ;;  %v1062_v27 = vrot.slane %v2544_v8, 1 }
 0x111   : > { %v824_v3 = vadd.f32 %v782_v37, %v666_v6  ;;  %1975 = vmatmul.msk.bf16.vlgmr.msra.gmra.mxu1 %vm330_vm2, %v1059_v19 }
 0x113   : > { %2015 = vmatmul.msk.bf16.vlgmr.msra.gmra.mxu2 %vm330_vm2, %v2319_v14  ;;  %v2793_v49 = vadd.f32 %v989_v0, %v824_v3  ;;  %v992_v9 = vpop.f32.mrf.mxu0 }
 0x114   : > { %2028 = vmatmul.msk.bf16.vlgmr.msra.gmra.mxu3 %vm330_vm2, %v2402_v54 }
 0x116   : > { %v627_v25 = vpop.f32.mrf.mxu2  ;;  %2041 = vmatmul.msk.bf16.vlgmr.msra.gmra.mxu0 %vm330_vm2, %v2583_v29  ;;  %v487_v44 = vpop.f32.mrf.mxu1 }
 0x117   : > { %v785_v12 = vpop.f32.mrf.mxu3  ;;  %v488_v48 = vadd.f32 %v487_v44, %v2659_v5 }
 0x11b   : > { %v993_v37 = vpop.f32.mrf.mxu0 }
 0x11e   : > { %v628_v30 = vpop.f32.mrf.mxu2  ;;  %v490_v14 = vpop.f32.mrf.mxu1 }
 0x11f   : > { %v667_v58 = vadd.f32 %v628_v30, %v488_v48  ;;  %v786_v33 = vpop.f32.mrf.mxu3  ;;  %v491_v22 = vadd.f32 %v490_v14, %v2672_v39  ;;  %v1063_v39 = vsel %vm535_vm3, %v1060_v1, %v1062_v27  ;;  %v1064_v48 = vrot.slane %v2577_v34, 1 }
 0x121   : > { %v825_v0 = vadd.f32 %v786_v33, %v667_v58  ;;  %1976 = vmatmul.msk.bf16.gmra.mxu1 %vm330_vm2, %v1061_v32 }
 0x123   : > { %2016 = vmatmul.msk.bf16.gmra.mxu2 %vm330_vm2, %v2329_v17  ;;  %v2805_v54 = vadd.f32 %v993_v37, %v825_v0  ;;  %v996_v29 = vpop.f32.mrf.mxu0 }
 0x124   : > { %2029 = vmatmul.msk.bf16.gmra.mxu3 %vm330_vm2, %v2462_v50 }
 0x126   : > { %v631_v5 = vpop.f32.mrf.mxu2  ;;  %2042 = vmatmul.msk.bf16.gmra.mxu0 %vm330_vm2, %v2601_v23  ;;  %v492_v35 = vpop.f32.mrf.mxu1 }
 0x127   : > { %v668_v57 = vadd.f32 %v631_v5, %v491_v22  ;;  %v789_v13 = vpop.f32.mrf.mxu3  ;;  %v1066_v5 = vrot.slane %v2595_v53, 1 }
 0x129   : > { %v826_v6 = vadd.f32 %v789_v13, %v668_v57 }
 0x12b   : > { %v2813_v19 = vadd.f32 %v996_v29, %v826_v6  ;;  %v998_v17 = vpop.f32.mrf.mxu0 }
 0x12e   : > { %v633_v3 = vpop.f32.mrf.mxu2  ;;  %v494_v9 = vpop.f32.mrf.mxu1 }
 0x12f   : > { %v791_v25 = vpop.f32.mrf.mxu3  ;;  %v495_v23 = vadd.f32 %v494_v9, %v2630_v43 }
 0x131   : > { %1977 = vmatmul.msk.bf16.gmra.mxu1 %vm330_vm2, %v1063_v39 }
 0x133   : > { %2017 = vmatmul.msk.bf16.gmra.mxu2 %vm330_vm2, %v2423_v63  ;;  %v1000_v50 = vpop.f32.mrf.mxu0 }
 0x134   : > { %2030 = vmatmul.msk.bf16.gmra.mxu3 %vm330_vm2, %v2509_v62  ;;  %v1065_v62 = vsel %vm535_vm3, %v1062_v27, %v1064_v48  ;;  %v1067_v27 = vsel %vm535_vm3, %v1064_v48, %v1066_v5 }
 0x136   : > { %v635_v8 = vpop.f32.mrf.mxu2  ;;  %2043 = vmatmul.msk.bf16.gmra.mxu0 %vm330_vm2, %v2621_v52  ;;  %v496_v12 = vpop.f32.mrf.mxu1 }
 0x137   : > { %v669_v44 = vadd.f32 %v635_v8, %v495_v23  ;;  %v793_v37 = vpop.f32.mrf.mxu3  ;;  %v497_v63 = vadd.f32 %v496_v12, %v2644_v10 }
 0x139   : > { %v827_v1 = vadd.f32 %v793_v37, %v669_v44  ;;  %v2004_v37 = vld [vmem:[%s2293_s8 + $0xa8] sm:$0xff] }
 0x13b   : > { %v2825_v30 = vadd.f32 %v1000_v50, %v827_v1  ;;  %v1002_v58 = vpop.f32.mrf.mxu0 }
 0x13e   : > { %v637_v14 = vpop.f32.mrf.mxu2  ;;  %v499_v32 = vpop.f32.mrf.mxu1 }
 0x13f   : > { %v670_v43 = vadd.f32 %v637_v14, %v497_v63  ;;  %v795_v33 = vpop.f32.mrf.mxu3 }
 0x141   : > { %v828_v0 = vadd.f32 %v795_v33, %v670_v43  ;;  %1978 = vmatmul.msk.bf16.gmra.mxu1 %vm330_vm2, %v1065_v62 }
 0x143   : > { %2018 = vmatmul.msk.bf16.gmra.mxu2 %vm330_vm2, %v2339_v20  ;;  %v2832_v52 = vadd.f32 %v1002_v58, %v828_v0  ;;  %v1005_v34 = vpop.f32.mrf.mxu0 }
 0x144   : > { %2031 = vmatmul.msk.bf16.gmra.mxu3 %vm330_vm2, %v2414_v59 }
 0x146   : > { %v640_v29 = vpop.f32.mrf.mxu2  ;;  %2044 = vmatmul.msk.bf16.gmra.mxu0 %vm330_vm2, %v2649_v2  ;;  %v500_v10 = vpop.f32.mrf.mxu1 }
 0x147   : > { %v798_v22 = vpop.f32.mrf.mxu3  ;;  %v501_v35 = vadd.f32 %v500_v10, %v2670_v36 }
 0x14b   : > { %v1006_v57 = vpop.f32.mrf.mxu0 }
 0x14e   : > { %v641_v13 = vpop.f32.mrf.mxu2  ;;  %v503_v20 = vpop.f32.mrf.mxu1 }
 0x14f   : > { %v671_v6 = vadd.f32 %v641_v13, %v501_v35  ;;  %v799_v17 = vpop.f32.mrf.mxu3  ;;  %v504_v53 = vadd.f32 %v503_v20, %v2688_v15 }
 0x151   : > { %v829_v3 = vadd.f32 %v799_v17, %v671_v6  ;;  %1979 = vmatmul.msk.bf16.gmra.mxu1 %vm330_vm2, %v1067_v27 }
 0x153   : > { %2019 = vmatmul.msk.bf16.gmra.mxu2 %vm330_vm2, %v2348_v24  ;;  %v2844_v59 = vadd.f32 %v1006_v57, %v829_v3  ;;  %v1009_v2 = vpop.f32.mrf.mxu0  ;;  %v1068_v24 = vrot.slane %v2613_v18, 1  ;;  %v3082_v3 = vld [vmem:[#allocation7_spill] sm:$0xff] }
 0x154   : > { %2032 = vmatmul.msk.bf16.gmra.mxu3 %vm330_vm2, %v2465_v51 }
 0x155   : > { %v1069_v12 = vsel %vm535_vm3, %v1066_v5, %v1068_v24 }
 0x156   : > { %v644_v36 = vpop.f32.mrf.mxu2  ;;  %2045 = vmatmul.msk.bf16.gmra.mxu0 %vm330_vm2, %v2677_v47  ;;  %v505_v39 = vpop.f32.mrf.mxu1  ;;  %v2003_v47 = vld [vmem:[%s2293_s8 + $0xa0] sm:$0xff] }
 0x157   : > { %v672_v9 = vadd.f32 %v644_v36, %v504_v53  ;;  %v802_v25 = vpop.f32.mrf.mxu3  ;;  %v1233_v58 = vpack.c.bf16 %v2004_v37, %v2003_v47  ;;  %v3083_v53 = vld [vmem:[#allocation8_spill] sm:$0xff]  ;;  %v3085_v47 = vld [vmem:[#allocation9_spill] sm:$0xff] }
 0x159   : > { %v830_v50 = vadd.f32 %v802_v25, %v672_v9  ;;  %v1407_v62 = vshll.u32 %v1233_v58, 16  ;;  %v1411_v17 = vshrl.u32 %v1233_v58, 16 }
 0x15b   : > { %v2852_v23 = vadd.f32 %v1009_v2, %v830_v50  ;;  %v1011_v8 = vpop.f32.mrf.mxu0  ;;  %v1409_v29 = vrot.slane %v1407_v62, 1  ;;  %v1072_v2 = vrot.slane %v3082_v3, 1  ;;  %v3087_v62 = vld [vmem:[#allocation10_spill] sm:$0xff] }
 0x15c   : > { %v3084_v8 = vld [vmem:[#allocation5_spill] sm:$0xff] }
 0x15d   : > { %v1410_v35 = vsel %vm229_vm1, %v2417_v60, %v1409_v29  ;;  %v1413_v9 = vor.u32 %v1411_v17, %v1409_v29 }
 0x15e   : > { %v646_v44 = vpop.f32.mrf.mxu2  ;;  %v507_v15 = vpop.f32.mrf.mxu1 }
 0x15f   : > { %v804_v51 = vpop.f32.mrf.mxu3  ;;  %v508_v48 = vadd.f32 %v507_v15, %v2635_v46  ;;  %v1417_v44 = vsel %vm229_vm1, %v1413_v9, %v3084_v8 }
 0x161   : > { %1980 = vmatmul.msk.bf16.gmra.mxu1 %vm330_vm2, %v1069_v12 }
 0x163   : > { %2020 = vmatmul.msk.bf16.gmra.mxu2 %vm330_vm2, %v2435_v4  ;;  %v1013_v1 = vpop.f32.mrf.mxu0  ;;  %v1070_v4 = vrot.slane %v2639_v56, 1 }
 0x164   : > { %2033 = vmatmul.msk.bf16.gmra.mxu3 %vm330_vm2, %v2513_v7 }
 0x165   : > { %v1071_v22 = vsel %vm535_vm3, %v1068_v24, %v1070_v4  ;;  %v1073_v50 = vsel %vm535_vm3, %v1070_v4, %v1072_v2  ;;  %v1074_v4 = vrot.slane %v3087_v62, 1 }
 0x166   : > { %v648_v18 = vpop.f32.mrf.mxu2  ;;  %2046 = vmatmul.msk.bf16.gmra.mxu0 %vm330_vm2, %v2704_v42  ;;  %v509_v14 = vpop.f32.mrf.mxu1  ;;  %v1591_v42 = vrot.slane %v1233_v58, 1 }
 0x167   : > { %v673_v63 = vadd.f32 %v648_v18, %v508_v48  ;;  %v806_v43 = vpop.f32.mrf.mxu3  ;;  %v510_v46 = vadd.f32 %v509_v14, %v2646_v61  ;;  %v3086_v48 = vld [vmem:[#allocation13_spill] sm:$0xff] }
 0x168   : > { %v1592_v13 = vsel %vm535_vm3, %v2698_v38, %v1591_v42  ;;  %v1594_v51 = vsel %vm535_vm3, %v1591_v42, %v2746_v55  ;;  %v1235_v18 = vpack.c.bf16 %v3086_v48, %v2474_v45 }
 0x169   : > { %v831_v32 = vadd.f32 %v806_v43, %v673_v63 }
 0x16a   : > { %v1595_v45 = vrot.slane %v1235_v18, 1 }
 0x16b   : > { %v2866_v33 = vadd.f32 %v1013_v1, %v831_v32  ;;  %v1015_v0 = vpop.f32.mrf.mxu0  ;;  %v1421_v32 = vshll.u32 %v1235_v18, 16 }
 0x16d   : > { %v1423_v29 = vrot.slane %v1421_v32, 1 }
 0x16e   : > { %v650_v34 = vpop.f32.mrf.mxu2  ;;  %v512_v10 = vpop.f32.mrf.mxu1 }
 0x16f   : > { %v674_v7 = vadd.f32 %v650_v34, %v510_v46  ;;  %v808_v5 = vpop.f32.mrf.mxu3  ;;  %v1075_v10 = vsel %vm535_vm3, %v1072_v2, %v1074_v4 }
 0x171   : > { %v832_v57 = vadd.f32 %v808_v5, %v674_v7  ;;  %1981 = vmatmul.msk.bf16.gmra.mxu1 %vm330_vm2, %v1071_v22  ;;  %v3088_v5 = vld [vmem:[#allocation6_spill] sm:$0xff] }
 0x172   : > { %v1424_v42 = vsel %vm229_vm1, %v3088_v5, %v1423_v29 }
 0x173   : > { %2021 = vmatmul.msk.bf16.gmra.mxu2 %vm330_vm2, %v2364_v31  ;;  %v2875_v56 = vadd.f32 %v1015_v0, %v832_v57  ;;  %v1018_v61 = vpop.f32.mrf.mxu0 }
 0x174   : > { %2034 = vmatmul.msk.bf16.gmra.mxu3 %vm330_vm2, %v1410_v35  ;;  %v1596_v35 = vsel %vm535_vm3, %v2746_v55, %v1595_v45  ;;  %v3089_v61 = vld [vmem:[#allocation11_spill] sm:$0xff]  ;;  %v2919_v55 = vld [vmem:[%s3060_s2] ss:$0 sm:$0xff] }
 0x176   : > { %v653_v6 = vpop.f32.mrf.mxu2  ;;  %2047 = vmatmul.msk.bf16.gmra.mxu0 %vm330_vm2, %v1592_v13  ;;  %v513_v20 = vpop.f32.mrf.mxu1 }
 0x177   : > { %v811_v27 = vpop.f32.mrf.mxu3  ;;  %v514_v36 = vadd.f32 %v513_v20, %v3083_v53  ;;  %v3090_v20 = vld [vmem:[#allocation14_spill] sm:$0xff] }
 0x178   : > { %v2912_v27 = vpack.c.bf16 %v2762_v26, %v3090_v20  ;;  %v1076_v26 = vrot.slane %v2716_v28, 1 }
 0x17a   : > { %v1428_v53 = vshll.u32 %v2912_v27, 16 }
 0x17b   : > { %v1019_v60 = vpop.f32.mrf.mxu0 }
 0x17e   : > { %v654_v31 = vpop.f32.mrf.mxu2  ;;  %v516_v25 = vpop.f32.mrf.mxu1 }
 0x17f   : > { %v675_v39 = vadd.f32 %v654_v31, %v514_v36  ;;  %v812_v38 = vpop.f32.mrf.mxu3  ;;  %v517_v37 = vadd.f32 %v516_v25, %v3085_v47 }
 0x181   : > { %v833_v24 = vadd.f32 %v812_v38, %v675_v39  ;;  %1982 = vmatmul.msk.bf16.gmra.mxu1 %vm330_vm2, %v1073_v50  ;;  %v3091_v39 = vld [vmem:[#allocation12_spill] sm:$0xff] }
 0x183   : > { %2022 = vmatmul.msk.bf16.gmra.mxu2 %vm330_vm2, %v1233_v58  ;;  %v2888_v15 = vadd.f32 %v1019_v60, %v833_v24  ;;  %v1022_v12 = vpop.f32.mrf.mxu0  ;;  %v1425_v60 = vshrl.u32 %v1235_v18, 16  ;;  %v1430_v24 = vrot.slane %v1428_v53, 1 }
 0x184   : > { %2035 = vmatmul.msk.bf16.gmra.mxu3 %vm330_vm2, %v1417_v44 }
 0x185   : > { %v1427_v38 = vor.u32 %v1425_v60, %v1423_v29 }
 0x186   : > { %v657_v1 = vpop.f32.mrf.mxu2  ;;  %2048 = vmatmul.msk.bf16.gmra.mxu0 %vm330_vm2, %v1594_v51  ;;  %v518_v14 = vpop.f32.mrf.mxu1  ;;  %v1077_v51 = vsel %vm535_vm3, %v1074_v4, %v1076_v26 }
 0x187   : > { %v676_v63 = vadd.f32 %v657_v1, %v517_v37  ;;  %v815_v43 = vpop.f32.mrf.mxu3  ;;  %v1597_v37 = vrot.slane %v2912_v27, 1  ;;  %v1431_v1 = vsel %vm229_vm1, %v1427_v38, %v1430_v24  ;;  %v2012_v14 = vld [vmem:[%s2293_s8 + $0xe8] sm:$0xff] }
 0x189   : > { %v834_v58 = vadd.f32 %v815_v43, %v676_v63  ;;  %v2011_v63 = vld [vmem:[%s2293_s8 + $0xe0] sm:$0xff] }
 0x18a   : > { %v1237_v4 = vpack.c.bf16 %v2012_v14, %v2011_v63 }
 0x18b   : > { %v2898_v0 = vadd.f32 %v1022_v12, %v834_v58  ;;  %v1024_v46 = vpop.f32.mrf.mxu0  ;;  %v1598_v58 = vsel %vm535_vm3, %v1595_v45, %v1597_v37 }
 0x18c   : > { %v1599_v20 = vrot.slane %v1237_v4, 1 }
 0x18e   : > { %v659_v34 = vpop.f32.mrf.mxu2  ;;  %v1130_v7 = vpop.f32.mrf.mxu1 }
 0x18f   : > { %v817_v22 = vpop.f32.mrf.mxu3  ;;  %v1182_v13 = vadd.f32 %v1130_v7, %v3089_v61  ;;  %v1435_v7 = vshll.u32 %v1237_v4, 16 }
 0x191   : > { %1983 = vmatmul.msk.bf16.gmra.mxu1 %vm330_vm2, %v1075_v10  ;;  %v1078_v10 = vrot.slane %v2743_v41, 1 }
 0x193   : > { %2023 = vmatmul.msk.bf16.gmra.mxu2 %vm330_vm2, %v2445_v11  ;;  %v1651_v57 = vpop.f32.mrf.mxu0 }
 0x194   : > { %2036 = vmatmul.msk.bf16.gmra.mxu3 %vm330_vm2, %v1424_v42 }
 0x196   : > { %v1288_v6 = vpop.f32.mrf.mxu2  ;;  %2049 = vmatmul.msk.bf16.gmra.mxu0 %vm330_vm2, %v1596_v35  ;;  %v1132_v3 = vpop.f32.mrf.mxu1 }
 0x197   : > { %v1340_v17 = vadd.f32 %v1288_v6, %v1182_v13  ;;  %v1495_v11 = vpop.f32.mrf.mxu3  ;;  %v1183_v25 = vadd.f32 %v1132_v3, %v3091_v39  ;;  %v1079_v13 = vsel %vm535_vm3, %v1076_v26, %v1078_v10 }
 0x199   : > { %v1547_v2 = vadd.f32 %v1495_v11, %v1340_v17 }
 0x19b   : > { %v1703_v36 = vadd.f32 %v1651_v57, %v1547_v2  ;;  %v1653_v31 = vpop.f32.mrf.mxu0  ;;  %v1437_v57 = vrot.slane %v1435_v7, 1  ;;  %v1600_v2 = vsel %vm535_vm3, %v1597_v37, %v1599_v20 }
 0x19d   : > { %v1723_v9 = vadd.f32 %v2919_v55, %v1703_v36 }
 0x19e   : > { %v1290_v50 = vpop.f32.mrf.mxu2  ;;  %v1135_v12 = vpop.f32.mrf.mxu1 }
 0x19f   : > { %v1739_v8 = vmax.f32 %v1723_v9, 0.0  ;;  %v1341_v44 = vadd.f32 %v1290_v50, %v1183_v25  ;;  %v1497_v47 = vpop.f32.mrf.mxu3  ;;  %v1439_v50 = vshrl.u32 %v1237_v4, 16 }
 0x1a1   : > { %1756 = vst.msk [vmem:[%s2929_s9] sm:$0xff] %vm1755_vm4, %v1739_v8  ;;  %v1548_v28 = vadd.f32 %v1497_v47, %v1341_v44  ;;  %1984 = vmatmul.msk.bf16.gmra.mxu1 %vm330_vm2, %v1077_v51  ;;  %v3092_v8 = vld [vmem:[#allocation15_spill] sm:$0xff]  ;;  %v1441_v47 = vor.u32 %v1439_v50, %v1437_v57 }
 0x1a2   : > { %v1080_v44 = vrot.slane %v3092_v8, 1 }
 0x1a3   : > { %v1704_v48 = vadd.f32 %v1653_v31, %v1548_v28  ;;  %2024 = vmatmul.msk.bf16.gmra.mxu2 %vm330_vm2, %v1235_v18  ;;  %v1656_v43 = vpop.f32.mrf.mxu0  ;;  %v1432_v18 = vshrl.u32 %v2912_v27, 16 }
 0x1a4   : > { %2037 = vmatmul.msk.bf16.gmra.mxu3 %vm330_vm2, %v1431_v1 }
 0x1a5   : > { %v1724_v32 = vadd.f32 %v2919_v55, %v1704_v48  ;;  %v1434_v42 = vor.u32 %v1432_v18, %v1430_v24  ;;  %v1081_v48 = vsel %vm535_vm3, %v1078_v10, %v1080_v44 }
 0x1a6   : > { %v1293_v62 = vpop.f32.mrf.mxu2  ;;  %2050 = vmatmul.msk.bf16.gmra.mxu0 %vm330_vm2, %v1598_v58  ;;  %v1136_v34 = vpop.f32.mrf.mxu1 }
 0x1a7   : > { %v1740_v46 = vmax.f32 %v1724_v32, 0.0  ;;  %v1500_v29 = vpop.f32.mrf.mxu3  ;;  %v1184_v45 = vadd.f32 %v1136_v34, %v2756_v21  ;;  %v1438_v3 = vsel %vm229_vm1, %v1434_v42, %v1437_v57  ;;  %v2013_v21 = vld [vmem:[%s2293_s8 + $0xf0] sm:$0xff]  ;;  %s2060_s8 = sshll.u32 %s2192_s15, 7  ;;  %s1773_s15 = scalar_lea.sflag [#allocation3], %s175_s4 }
 0x1a8   : > { %v1356_v26 = vpack.c.bf16 %v2013_v21, %v2013_v21  ;;  %s1787_s18 = scalar_lea.hbm %s3061_s3, %s2060_s8 }
 0x1a9   : > { %1757 = vst.msk [vmem:[%s2929_s9 + $0x8] sm:$0xff] %vm1755_vm4, %v1740_v46  ;;  %s1790_s21 = sshll.u32 %s1787_s18, 4  ;;  %s1791_s21 = int_to_ptr.hbm [resolvable:$true] %s1790_s21 }
 0x1aa   : > { %v1443_v38 = vshll.u32 %v1356_v26, 16  ;;  %v1601_v14 = vrot.slane %v1356_v26, 1  ;;  %s2136_s23 = sshra.s32 %s1791_s21, 4  ;;  %s2137_s23 = int_to_ptr.hbm [resolvable:$true] %s2136_s23 }
 0x1ab   : > { %v1657_v22 = vpop.f32.mrf.mxu0  ;;  %s2138_s26 = scalar_lea.hbm %s2137_s23, 128  ;;  %p2143_p0 = scmp.lt.s32.totalorder %s2137_s23, %s3061_s3 }
 0x1ac   : > { %v1445_v37 = vrot.slane %v1443_v38, 1  ;;  %v1602_v32 = vsel %vm535_vm3, %v1599_v20, %v1601_v14  ;;  %p2139_p11 = scmp.ne.s32.totalorder %s2137_s23, %s2138_s26  ;;  %p2144_p1 = scmp.lt.s32.totalorder %s2142_s29, %s2138_s26 }
 0x1ae   : > { %v1294_v5 = vpop.f32.mrf.mxu2  ;;  %v1139_v61 = vpop.f32.mrf.mxu1  ;;  %v1446_v43 = vsel %vm229_vm1, %v1441_v47, %v1445_v37  ;;  %p2140_p12 = pnand %p2139_p11, %p2264_p4  ;;  %p2145_p2 = por %p2144_p1, %p2143_p0 }
 0x1af   : > { %v1342_v35 = vadd.f32 %v1294_v5, %v1184_v45  ;;  %v1501_v6 = vpop.f32.mrf.mxu3  ;;  %v1185_v53 = vadd.f32 %v1139_v61, %v2769_v40 }
 0x1b0   : > { %p2141_p13 = pneg %p2140_p12 }
 0x1b1   : > { %v1549_v17 = vadd.f32 %v1501_v6, %v1342_v35  ;;  %1985 = vmatmul.msk.bf16.gmra.mxu1 %vm330_vm2, %v1079_v13 }
 0x1b2   : > { %p2146_p3 = pnand %p2145_p2, %p2141_p13 }
 0x1b3   : > { %v1705_v41 = vadd.f32 %v1657_v22, %v1549_v17  ;;  %2025 = vmatmul.msk.bf16.gmra.mxu2 %vm330_vm2, %v2912_v27  ;;  %v1660_v11 = vpop.f32.mrf.mxu0 }
 0x1b4   : > { %2038 = vmatmul.msk.bf16.gmra.mxu3 %vm330_vm2, %v1438_v3 }
 0x1b5   : > { %v1725_v60 = vadd.f32 %v2919_v55, %v1705_v41 }
 0x1b6   : > { %v1297_v36 = vpop.f32.mrf.mxu2  ;;  %2051 = vmatmul.msk.bf16.gmra.mxu0 %vm330_vm2, %v1600_v2  ;;  %v1141_v39 = vpop.f32.mrf.mxu1 }
 0x1b7   : > { %v1741_v31 = vmax.f32 %v1725_v60, 0.0  ;;  %v1343_v9 = vadd.f32 %v1297_v36, %v1185_v53  ;;  %v1504_v25 = vpop.f32.mrf.mxu3 }
 0x1b9   : > { %1758 = vst.msk [vmem:[%s2929_s9 + $0x10] sm:$0xff] %vm1755_vm4, %v1741_v31  ;;  %v1550_v27 = vadd.f32 %v1504_v25, %v1343_v9 }
 0x1bb   : > { %v1706_v24 = vadd.f32 %v1660_v11, %v1550_v27  ;;  %v1662_v40 = vpop.f32.mrf.mxu0 }
 0x1bd   : > { %v1726_v12 = vadd.f32 %v2919_v55, %v1706_v24 }
 0x1be   : > { %v1299_v51 = vpop.f32.mrf.mxu2  ;;  %v1143_v1 = vpop.f32.mrf.mxu1 }
 0x1bf   : > { %v1742_v28 = vmax.f32 %v1726_v12, 0.0  ;;  %v1506_v63 = vpop.f32.mrf.mxu3  ;;  %v1186_v62 = vadd.f32 %v1143_v1, %v2786_v16 }
 0x1c1   : > { %1759 = vst.msk [vmem:[%s2929_s9 + $0x18] sm:$0xff] %vm1755_vm4, %v1742_v28  ;;  %1986 = vmatmul.msk.bf16.gmra.mxu1 %vm330_vm2, %v1081_v48 }
 0x1c3   : > { %2026 = vmatmul.msk.bf16.gmra.mxu2 %vm330_vm2, %v1237_v4  ;;  %v1664_v58 = vpop.f32.mrf.mxu0 }
 0x1c4   : > { %2039 = vmatmul.msk.bf16.gmra.mxu3 %vm330_vm2, %v1446_v43 }
 0x1c6   : > { %v1301_v46 = vpop.f32.mrf.mxu2  ;;  %2052 = vmatmul.msk.bf16.gmra.mxu0 %vm330_vm2, %v1602_v32  ;;  %v1145_v29 = vpop.f32.mrf.mxu1 }
 0x1c7   : > { %v1344_v34 = vadd.f32 %v1301_v46, %v1186_v62  ;;  %v1508_v18 = vpop.f32.mrf.mxu3  ;;  %v1187_v4 = vadd.f32 %v1145_v29, %v2793_v49 }
 0x1c9   : > { %v1551_v7 = vadd.f32 %v1508_v18, %v1344_v34 }
 0x1cb   : > { %v1707_v10 = vadd.f32 %v1664_v58, %v1551_v7  ;;  %v1666_v22 = vpop.f32.mrf.mxu0 }
 0x1cd   : > { %v1727_v45 = vadd.f32 %v2919_v55, %v1707_v10 }
 0x1ce   : > { %v1303_v5 = vpop.f32.mrf.mxu2  ;;  %v1148_v57 = vpop.f32.mrf.mxu1 }
 0x1cf   : > { %v1743_v42 = vmax.f32 %v1727_v45, 0.0  ;;  %v1345_v16 = vadd.f32 %v1303_v5, %v1187_v4  ;;  %v1510_v35 = vpop.f32.mrf.mxu3 }
 0x1d1   : > { %1760 = vst.msk [vmem:[%s2929_s9 + $0x20] sm:$0xff] %vm1755_vm4, %v1743_v42  ;;  %v1552_v61 = vadd.f32 %v1510_v35, %v1345_v16 }
 0x1d3   : > { %v1708_v13 = vadd.f32 %v1666_v22, %v1552_v61  ;;  %v1669_v6 = vpop.f32.mrf.mxu0 }
 0x1d5   : > { %v1728_v20 = vadd.f32 %v2919_v55, %v1708_v13 }
 0x1d6   : > { %v1306_v17 = vpop.f32.mrf.mxu2  ;;  %v1149_v41 = vpop.f32.mrf.mxu1 }
 0x1d7   : > { %v1744_v3 = vmax.f32 %v1728_v20, 0.0  ;;  %v1513_v21 = vpop.f32.mrf.mxu3  ;;  %v1188_v49 = vadd.f32 %v1149_v41, %v2805_v54 }
 0x1d9   : > { %1761 = vst.msk [vmem:[%s2929_s9 + $0x28] sm:$0xff] %vm1755_vm4, %v1744_v3 }
 0x1db   : > { %v1670_v11 = vpop.f32.mrf.mxu0 }
 0x1de   : > { %v1307_v2 = vpop.f32.mrf.mxu2  ;;  %v1152_v53 = vpop.f32.mrf.mxu1 }
 0x1df   : > { %v1346_v60 = vadd.f32 %v1307_v2, %v1188_v49  ;;  %v1514_v36 = vpop.f32.mrf.mxu3  ;;  %v1189_v25 = vadd.f32 %v1152_v53, %v2813_v19 }
 0x1e1   : > { %v1553_v26 = vadd.f32 %v1514_v36, %v1346_v60 }
 0x1e3   : > { %v1709_v31 = vadd.f32 %v1670_v11, %v1553_v26  ;;  %v1673_v9 = vpop.f32.mrf.mxu0 }
 0x1e5   : > { %v1729_v39 = vadd.f32 %v2919_v55, %v1709_v31 }
 0x1e6   : > { %v1310_v27 = vpop.f32.mrf.mxu2  ;;  %v1154_v24 = vpop.f32.mrf.mxu1 }
 0x1e7   : > { %v1745_v50 = vmax.f32 %v1729_v39, 0.0  ;;  %v1347_v38 = vadd.f32 %v1310_v27, %v1189_v25  ;;  %v1517_v8 = vpop.f32.mrf.mxu3 }
 0x1e9   : > { %1762 = vst.msk [vmem:[%s2929_s9 + $0x30] sm:$0xff] %vm1755_vm4, %v1745_v50  ;;  %v1554_v54 = vadd.f32 %v1517_v8, %v1347_v38 }
 0x1eb   : > { %v1710_v44 = vadd.f32 %v1673_v9, %v1554_v54  ;;  %v1675_v40 = vpop.f32.mrf.mxu0 }
 0x1ed   : > { %v1730_v12 = vadd.f32 %v2919_v55, %v1710_v44 }
 0x1ee   : > { %v1312_v51 = vpop.f32.mrf.mxu2  ;;  %v1156_v37 = vpop.f32.mrf.mxu1 }
 0x1ef   : > { %v1746_v47 = vmax.f32 %v1730_v12, 0.0  ;;  %v1519_v28 = vpop.f32.mrf.mxu3  ;;  %v1190_v19 = vadd.f32 %v1156_v37, %v2825_v30 }
 0x1f1   : > { %1763 = vst.msk [vmem:[%s2929_s9 + $0x38] sm:$0xff] %vm1755_vm4, %v1746_v47 }
 0x1f3   : > { %v1677_v1 = vpop.f32.mrf.mxu0 }
 0x1f6   : > { %v1314_v48 = vpop.f32.mrf.mxu2  ;;  %v1158_v14 = vpop.f32.mrf.mxu1 }
 0x1f7   : > { %v1348_v63 = vadd.f32 %v1314_v48, %v1190_v19  ;;  %v1521_v43 = vpop.f32.mrf.mxu3  ;;  %v1191_v34 = vadd.f32 %v1158_v14, %v2832_v52 }
 0x1f9   : > { %v1555_v58 = vadd.f32 %v1521_v43, %v1348_v63 }
 0x1fb   : > { %v1711_v32 = vadd.f32 %v1677_v1, %v1555_v58  ;;  %v1679_v62 = vpop.f32.mrf.mxu0 }
 0x1fd   : > { %v1731_v46 = vadd.f32 %v2919_v55, %v1711_v32 }
 0x1fe   : > { %v1316_v29 = vpop.f32.mrf.mxu2  ;;  %v1161_v10 = vpop.f32.mrf.mxu1 }
 0x1ff   : > { %v1747_v18 = vmax.f32 %v1731_v46, 0.0  ;;  %v1349_v7 = vadd.f32 %v1316_v29, %v1191_v34  ;;  %v1523_v22 = vpop.f32.mrf.mxu3 }
 0x201   : > { %1764 = vst.msk [vmem:[%s2929_s9 + $0x40] sm:$0xff] %vm1755_vm4, %v1747_v18  ;;  %v1556_v30 = vadd.f32 %v1523_v22, %v1349_v7 }
 0x203   : > { %v1712_v45 = vadd.f32 %v1679_v62, %v1556_v30  ;;  %v1682_v4 = vpop.f32.mrf.mxu0 }
 0x205   : > { %v1732_v5 = vadd.f32 %v2919_v55, %v1712_v45 }
 0x206   : > { %v1319_v42 = vpop.f32.mrf.mxu2  ;;  %v1162_v57 = vpop.f32.mrf.mxu1 }
 0x207   : > { %v1748_v16 = vmax.f32 %v1732_v5, 0.0  ;;  %v1526_v35 = vpop.f32.mrf.mxu3  ;;  %v1192_v52 = vadd.f32 %v1162_v57, %v2844_v59 }
 0x209   : > { %1765 = vst.msk [vmem:[%s2929_s9 + $0x48] sm:$0xff] %vm1755_vm4, %v1748_v16 }
 0x20b   : > { %v1683_v61 = vpop.f32.mrf.mxu0 }
 0x20e   : > { %v1320_v13 = vpop.f32.mrf.mxu2  ;;  %v1165_v20 = vpop.f32.mrf.mxu1 }
 0x20f   : > { %v1350_v6 = vadd.f32 %v1320_v13, %v1192_v52  ;;  %v1527_v17 = vpop.f32.mrf.mxu3  ;;  %v1193_v49 = vadd.f32 %v1165_v20, %v2852_v23 }
 0x211   : > { %v1557_v3 = vadd.f32 %v1527_v17, %v1350_v6 }
 0x213   : > { %v1713_v41 = vadd.f32 %v1683_v61, %v1557_v3  ;;  %v1686_v21 = vpop.f32.mrf.mxu0 }
 0x215   : > { %v1733_v11 = vadd.f32 %v2919_v55, %v1713_v41 }
 0x216   : > { %v1323_v2 = vpop.f32.mrf.mxu2  ;;  %v1167_v36 = vpop.f32.mrf.mxu1 }
 0x217   : > { %v1749_v60 = vmax.f32 %v1733_v11, 0.0  ;;  %v1351_v53 = vadd.f32 %v1323_v2, %v1193_v49  ;;  %v1530_v26 = vpop.f32.mrf.mxu3 }
 0x219   : > { %1766 = vst.msk [vmem:[%s2929_s9 + $0x50] sm:$0xff] %vm1755_vm4, %v1749_v60  ;;  %v1558_v59 = vadd.f32 %v1530_v26, %v1351_v53 }
 0x21b   : > { %v1714_v31 = vadd.f32 %v1686_v21, %v1558_v59  ;;  %v1688_v9 = vpop.f32.mrf.mxu0 }
 0x21d   : > { %v1734_v39 = vadd.f32 %v2919_v55, %v1714_v31 }
 0x21e   : > { %v1325_v25 = vpop.f32.mrf.mxu2  ;;  %v1169_v50 = vpop.f32.mrf.mxu1 }
 0x21f   : > { %v1750_v27 = vmax.f32 %v1734_v39, 0.0  ;;  %v1532_v38 = vpop.f32.mrf.mxu3  ;;  %v1194_v23 = vadd.f32 %v1169_v50, %v2866_v33 }
 0x221   : > { %1767 = vst.msk [vmem:[%s2929_s9 + $0x58] sm:$0xff] %vm1755_vm4, %v1750_v27 }
 0x223   : > { %v1690_v24 = vpop.f32.mrf.mxu0 }
 0x226   : > { %v1327_v8 = vpop.f32.mrf.mxu2  ;;  %v1171_v44 = vpop.f32.mrf.mxu1 }
 0x227   : > { %v1352_v54 = vadd.f32 %v1327_v8, %v1194_v23  ;;  %v1534_v40 = vpop.f32.mrf.mxu3  ;;  %v1195_v28 = vadd.f32 %v1171_v44, %v2875_v56 }
 0x229   : > { %v1559_v12 = vadd.f32 %v1534_v40, %v1352_v54 }
 0x22b   : > { %v1715_v51 = vadd.f32 %v1690_v24, %v1559_v12  ;;  %v1692_v47 = vpop.f32.mrf.mxu0 }
 0x22d   : > { %v1735_v37 = vadd.f32 %v2919_v55, %v1715_v51 }
 0x22e   : > { %v1329_v1 = vpop.f32.mrf.mxu2  ;;  %v1174_v63 = vpop.f32.mrf.mxu1 }
 0x22f   : > { %v1751_v19 = vmax.f32 %v1735_v37, 0.0  ;;  %v1353_v48 = vadd.f32 %v1329_v1, %v1195_v28  ;;  %v1536_v14 = vpop.f32.mrf.mxu3 }
 0x231   : > { %1768 = vst.msk [vmem:[%s2929_s9 + $0x60] sm:$0xff] %vm1755_vm4, %v1751_v19  ;;  %v1560_v33 = vadd.f32 %v1536_v14, %v1353_v48 }
 0x233   : > { %v1716_v43 = vadd.f32 %v1692_v47, %v1560_v33  ;;  %v1695_v58 = vpop.f32.mrf.mxu0 }
 0x235   : > { %v1736_v32 = vadd.f32 %v2919_v55, %v1716_v43 }
 0x236   : > { %v1332_v62 = vpop.f32.mrf.mxu2  ;;  %v1175_v34 = vpop.f32.mrf.mxu1 }
 0x237   : > { %v1752_v46 = vmax.f32 %v1736_v32, 0.0  ;;  %v1539_v29 = vpop.f32.mrf.mxu3  ;;  %v1196_v18 = vadd.f32 %v1175_v34, %v2888_v15 }
 0x239   : > { %1769 = vst.msk [vmem:[%s2929_s9 + $0x68] sm:$0xff] %vm1755_vm4, %v1752_v46 }
 0x23b   : > { %v1696_v56 = vpop.f32.mrf.mxu0 }
 0x23e   : > { %v1333_v7 = vpop.f32.mrf.mxu2  ;;  %v1178_v22 = vpop.f32.mrf.mxu1 }
 0x23f   : > { %v1354_v10 = vadd.f32 %v1333_v7, %v1196_v18  ;;  %v1540_v30 = vpop.f32.mrf.mxu3  ;;  %v1197_v16 = vadd.f32 %v1178_v22, %v2898_v0 }
 0x241   : > { %v1561_v45 = vadd.f32 %v1540_v30, %v1354_v10 }
 0x243   : > { %v1717_v4 = vadd.f32 %v1696_v56, %v1561_v45  ;;  %v1699_v5 = vpop.f32.mrf.mxu0 }
 0x245   : > { %v1737_v42 = vadd.f32 %v2919_v55, %v1717_v4 }
 0x246   : > { %v1336_v57 = vpop.f32.mrf.mxu2  ;;  %v1180_v52 = vpop.f32.mrf.mxu1 }
 0x247   : > { %v1753_v35 = vmax.f32 %v1737_v42, 0.0  ;;  %v1355_v61 = vadd.f32 %v1336_v57, %v1197_v16  ;;  %v1543_v15 = vpop.f32.mrf.mxu3 }
 0x249   : > { %1770 = vst.msk [vmem:[%s2929_s9 + $0x70] sm:$0xff] %vm1755_vm4, %v1753_v35  ;;  %v1562_v13 = vadd.f32 %v1543_v15, %v1355_v61 }
 0x24b   : > { %v1718_v6 = vadd.f32 %v1699_v5, %v1562_v13  ;;  %v1701_v0 = vpop.f32.mrf.mxu0 }
 0x24d   : > { %v1738_v20 = vadd.f32 %v2919_v55, %v1718_v6 }
 0x24e   : > { %v1338_v17 = vpop.f32.mrf.mxu2 }
 0x24f   : > { %v1754_v3 = vmax.f32 %v1738_v20, 0.0  ;;  %v1545_v41 = vpop.f32.mrf.mxu3 }
 0x251   : > { %1771 = vst.msk [vmem:[%s2929_s9 + $0x78] sm:$0xff] %vm1755_vm4, %v1754_v3 }
 0x252   : > { %2149 = shalt.err (!%p2146_p3)
}
 0x253   : > { %s2202_s4 = smov 128   ;;  %s2203_s6 = smov 8  }
 0x254   : > { %2064 = dma.vmem_to_hbm [thread:$0]  (%p2264_p4), %s1789_s19, 2048, %s1791_s21, %s1773_s15, %s2202_s4, %s2202_s4, %s2203_s6  }
 0x255 PF: > { %p2070_p5 = scmp.ge.s32.totalorder %s2200_s17, 2  ;;  %s1805_s7 = sand.u32 1, %s2180_s12  }
 0x256   : > { %s1806_s9 = scalar_lea.sflag [#allocation3], %s1805_s7 }
 0x257   : > { %p2067_p6 = pnand %p2070_p5, %p2271_p8 }
 0x259   : > { %p2068_p7 = pneg %p2067_p6 }
 0x25b   : > { %2175 = dma.done.wait (%p2068_p7), %s1806_s9, 2048  }
 0x25c   : > { %2177 = vsyncadd (%p2068_p7), %s1806_s9, 4294965248  ;;  %s16_s17 = sadd.s32 1, %s2200_s17   ;;  %s3093_s12 = smov %s2184_s13 }
 0x25d   : > { %p13_p9 = scmp.ge.s32.totalorder %s16_s17, 4   ;;  %s3094_s13 = smov %s2188_s14 }
 0x25e   : > { %s3095_s14 = smov %s2277_s25  ;;  %s3096_s15 = smov %s2196_s16 }
 0x25f   : > { %s3097_s16 = smov %s3099_s20  ;;  %15 = sbr.rel (!%p13_p9) target bundleno = 4 (0x4), region = 78 }
 0x264   :  { %1812 = vsyncpa [#allocation3], 1 }
 0x265   :  { %1814 = vsyncpa [#allocation3 + $0x1], 1 }

</bundles_post_ra>
